<compile_context>
chip_gen: v7x
topology: tpu7x:2x2x1
jax: 0.10.0
libtpu: 0.0.40
codegen_flags: <defaults>
</compile_context>

<pallas_src>
import math

import jax
import jax.numpy as jnp
from jax.experimental import pallas as pl
from jax.experimental.pallas import tpu as pltpu


def _round_up(x, m):
    return ((x + m - 1) // m) * m


# ----------------------------------------------------------------------------
# Kernel 1: flow head = 3x3 conv (padding=1), taps built in-kernel with rolls.
# ----------------------------------------------------------------------------
def _conv3x3_kernel(w_ref, x_ref, o_ref):
    # w_ref: SMEM (Cout*Cin*9,) f32 scalars
    # x_ref: VMEM (1, Cin, Hp, Wp) f32   (1-pixel zero border + tile padding)
    # o_ref: VMEM (1, Cout, Hp, Wp) f32  (valid conv lives in [:H, :W])
    cin = x_ref.shape[1]
    cout = o_ref.shape[1]
    hp, wp = x_ref.shape[2], x_ref.shape[3]
    accs = [jnp.zeros((hp, wp), jnp.float32) for _ in range(cout)]
    for ci in range(cin):
        xc = x_ref[0, ci]                                        # (Hp, Wp)
        for ky in range(3):
            # out[i, j] needs x[i+ky, j+kx]; roll by -ky / -kx (no wrap in the
            # valid [:H, :W] region because Hp >= H+2, Wp >= W+2).
            xk = xc if ky == 0 else pltpu.roll(xc, shift=hp - ky, axis=0)
            for kx in range(3):
                tap = xk if kx == 0 else pltpu.roll(xk, shift=wp - kx, axis=1)
                for co in range(cout):
                    wv = w_ref[co * cin * 9 + ci * 9 + ky * 3 + kx]
                    accs[co] = accs[co] + wv * tap
    for co in range(cout):
        o_ref[0, co] = accs[co]


def flow_conv(x, w):
    # x: (N, Cin, H, W) f32, w: (Cout, Cin, 3, 3) f32 -> (N, Cout, H, W) f32
    N, Cin, H, W = x.shape
    Cout = w.shape[0]
    Hp = _round_up(H + 2, 8)
    Wp = _round_up(W + 2, 128)
    # 1-pixel zero border (conv padding=1) + fill up to (8,128)-aligned tiles.
    xpad = jnp.pad(x, ((0, 0), (0, 0), (1, Hp - H - 1), (1, Wp - W - 1)))
    wflat = w.reshape(-1).astype(jnp.float32)

    out = pl.pallas_call(
        _conv3x3_kernel,
        grid=(N,),
        in_specs=[
            pl.BlockSpec(memory_space=pltpu.MemorySpace.SMEM),   # 108 scalars
            pl.BlockSpec((1, Cin, Hp, Wp), lambda i: (i, 0, 0, 0)),
        ],
        out_specs=pl.BlockSpec((1, Cout, Hp, Wp), lambda i: (i, 0, 0, 0)),
        out_shape=jax.ShapeDtypeStruct((N, Cout, Hp, Wp), jnp.float32),
        compiler_params=pltpu.CompilerParams(dimension_semantics=("parallel",)),
    )(wflat, xpad)
    return out[:, :, :H, :W]


def compute_flows(anchor, pred, src_rest, conv_w):
    """Fused flow computation for both pred and src frame pairs."""
    b, c, tm1, h, w = pred.shape
    n = b * tm1
    pred_f = jnp.transpose(pred, (0, 2, 1, 3, 4)).reshape(n, c, h, w)
    src_f = jnp.transpose(src_rest, (0, 2, 1, 3, 4)).reshape(n, c, h, w)
    anc = jnp.broadcast_to(anchor[:, None], (b, tm1, c, h, w)).reshape(n, c, h, w)
    x = jnp.concatenate([
        jnp.concatenate([anc, pred_f], axis=1),
        jnp.concatenate([anc, src_f], axis=1),
    ], axis=0)                                            # (2n, 2c, h, w)
    flow = flow_conv(x, conv_w)                           # (2n, 2, h, w)
    flow_pred = flow[:n].reshape(b, tm1, 2, h, w)
    flow_src = flow[n:].reshape(b, tm1, 2, h, w)
    return flow_pred, flow_src


# ----------------------------------------------------------------------------
# Kernel 2: magnification loss  mean(|flow_pred - alpha * flow_src|)
#           (sublane+lane dense tiles, per-row alpha, resident accumulator)
# ----------------------------------------------------------------------------
def _mag_l1_kernel(a_ref, fp_ref, fs_ref, o_ref):
    @pl.when(pl.program_id(0) == 0)
    def _():
        o_ref[...] = jnp.zeros_like(o_ref)
    diff = fp_ref[...] - a_ref[...] * fs_ref[...]         # (TR, L), alpha (TR, 1)
    o_ref[...] = o_ref[...] + jnp.sum(jnp.abs(diff))


def mag_l1_loss(flow_pred, flow_src, alphas, *, lane=512, row_tile=128):
    # flow_pred/flow_src: (b, t-1, 2, h, w), alphas: (b,)
    b = flow_pred.shape[0]
    numel = math.prod(flow_pred.shape)
    p = numel // b
    pp = _round_up(p, lane)
    rows_per_b = pp // lane
    rows = b * rows_per_b

    fp = jnp.pad(flow_pred.reshape(b, p), ((0, 0), (0, pp - p))).reshape(rows, lane)
    fs = jnp.pad(flow_src.reshape(b, p), ((0, 0), (0, pp - p))).reshape(rows, lane)
    a = jnp.repeat(alphas.astype(jnp.float32), rows_per_b).reshape(rows, 1)

    tr = min(row_tile, _round_up(rows, 8))
    rows_p = _round_up(rows, tr)
    if rows_p != rows:
        fp = jnp.pad(fp, ((0, rows_p - rows), (0, 0)))
        fs = jnp.pad(fs, ((0, rows_p - rows), (0, 0)))
        a = jnp.pad(a, ((0, rows_p - rows), (0, 0)))

    out = pl.pallas_call(
        _mag_l1_kernel,
        grid=(rows_p // tr,),
        in_specs=[
            pl.BlockSpec((tr, 1), lambda i: (i, 0)),
            pl.BlockSpec((tr, lane), lambda i: (i, 0)),
            pl.BlockSpec((tr, lane), lambda i: (i, 0)),
        ],
        out_specs=pl.BlockSpec((1, 1), lambda i: (0, 0)),
        out_shape=jax.ShapeDtypeStruct((1, 1), jnp.float32),
        compiler_params=pltpu.CompilerParams(dimension_semantics=("arbitrary",)),
    )(a, fp, fs)
    return out[0, 0] / float(numel)


# ----------------------------------------------------------------------------
# Kernel 3: 4-tap bilinear warp combine + fused color-loss reduction.
#           bf16 corner/weight traffic, hw axis tiled as a second grid axis.
# ----------------------------------------------------------------------------
def _warp_combine_kernel(pg_ref, pw_ref, sg_ref, sw_ref, po_ref, so_ref, loss_ref):
    # pg_ref/sg_ref: (1, C, 4, T) bf16 gathered corner values
    # pw_ref/sw_ref: (1, 4, T) bf16 bilinear weights (0 for OOB / padded lanes)
    # po_ref/so_ref: (1, C, T) f32 warped frames; loss_ref: (1,1) running L1 sum
    @pl.when((pl.program_id(0) == 0) & (pl.program_id(1) == 0))
    def _():
        loss_ref[...] = jnp.zeros_like(loss_ref)
    # pred side first, then src side, to keep f32 live ranges short.
    pg = pg_ref[0].astype(jnp.float32)                    # (C, 4, T)
    pw = pw_ref[0].astype(jnp.float32)                    # (4, T)
    pwarp = jnp.sum(pg * pw[None, :, :], axis=1)          # (C, T)
    po_ref[0] = pwarp
    sg = sg_ref[0].astype(jnp.float32)
    sw = sw_ref[0].astype(jnp.float32)
    swarp = jnp.sum(sg * sw[None, :, :], axis=1)
    so_ref[0] = swarp
    loss_ref[...] = loss_ref[...] + jnp.sum(jnp.abs(pwarp - swarp))


def _bilinear_taps(flow):
    # flow: (N, 2, H, W) pixel displacements ->
    #   idx: (N, 4, HW) int32 clipped flat source indices
    #   wgt: (N, 4, HW) f32 bilinear weights (zeroed for out-of-bounds corners)
    N, _, H, W = flow.shape
    ys, xs = jnp.meshgrid(jnp.arange(H, dtype=jnp.float32),
                          jnp.arange(W, dtype=jnp.float32), indexing="ij")
    sx = xs[None] + flow[:, 0]
    sy = ys[None] + flow[:, 1]
    x0f = jnp.floor(sx)
    y0f = jnp.floor(sy)
    wx = sx - x0f
    wy = sy - y0f
    x0 = x0f.astype(jnp.int32)
    y0 = y0f.astype(jnp.int32)
    x1 = x0 + 1
    y1 = y0 + 1
    idxs, wgts = [], []
    for xi, yi, wgt in ((x0, y0, (1.0 - wx) * (1.0 - wy)),
                        (x1, y0, wx * (1.0 - wy)),
                        (x0, y1, (1.0 - wx) * wy),
                        (x1, y1, wx * wy)):
        valid = (xi >= 0) & (xi <= W - 1) & (yi >= 0) & (yi <= H - 1)
        q = jnp.clip(yi, 0, H - 1) * W + jnp.clip(xi, 0, W - 1)
        idxs.append(q.reshape(N, H * W))
        wgts.append(jnp.where(valid, wgt, 0.0).reshape(N, H * W))
    return jnp.stack(idxs, axis=1), jnp.stack(wgts, axis=1)


def _gather_corners(frames_flat, idx):
    # frames_flat: (N, C, HW) f32, idx: (N, 4, HW) int32 -> (N, C, 4, HW)
    return jax.vmap(lambda f, i: f[:, i])(frames_flat, idx)


def warp_and_color_loss(pred, src_rest, flow_pred, flow_src, *, max_lane_tile=4096):
    # pred/src_rest: (b, c, t-1, h, w); flows: (b, t-1, 2, h, w)
    b, c, tm1, h, w = pred.shape
    n = b * tm1
    hw = h * w
    lane_t = min(max_lane_tile, _round_up(hw, 128))
    hwp = _round_up(hw, lane_t)
    nt = hwp // lane_t

    pred_f = jnp.transpose(pred, (0, 2, 1, 3, 4)).reshape(n, c, hw)
    src_f = jnp.transpose(src_rest, (0, 2, 1, 3, 4)).reshape(n, c, hw)
    p_idx, p_w = _bilinear_taps(flow_pred.reshape(n, 2, h, w))
    s_idx, s_w = _bilinear_taps(flow_src.reshape(n, 2, h, w))

    # bf16 for the dominant HBM traffic; combine + loss stay f32 in-kernel.
    pg = _gather_corners(pred_f, p_idx).astype(jnp.bfloat16)   # (n, c, 4, hw)
    sg = _gather_corners(src_f, s_idx).astype(jnp.bfloat16)
    pw = p_w.astype(jnp.bfloat16)                              # (n, 4, hw)
    sw = s_w.astype(jnp.bfloat16)

    if hwp != hw:
        pad4 = ((0, 0), (0, 0), (0, 0), (0, hwp - hw))
        pad3 = ((0, 0), (0, 0), (0, hwp - hw))
        pg = jnp.pad(pg, pad4)
        sg = jnp.pad(sg, pad4)
        pw = jnp.pad(pw, pad3)
        sw = jnp.pad(sw, pad3)

    pred_warp, src_warp, loss_sum = pl.pallas_call(
        _warp_combine_kernel,
        grid=(n, nt),
        in_specs=[
            pl.BlockSpec((1, c, 4, lane_t), lambda i, j: (i, 0, 0, j)),
            pl.BlockSpec((1, 4, lane_t), lambda i, j: (i, 0, j)),
            pl.BlockSpec((1, c, 4, lane_t), lambda i, j: (i, 0, 0, j)),
            pl.BlockSpec((1, 4, lane_t), lambda i, j: (i, 0, j)),
        ],
        out_specs=(
            pl.BlockSpec((1, c, lane_t), lambda i, j: (i, 0, j)),
            pl.BlockSpec((1, c, lane_t), lambda i, j: (i, 0, j)),
            pl.BlockSpec((1, 1), lambda i, j: (0, 0)),
        ),
        out_shape=(
            jax.ShapeDtypeStruct((n, c, hwp), jnp.float32),
            jax.ShapeDtypeStruct((n, c, hwp), jnp.float32),
            jax.ShapeDtypeStruct((1, 1), jnp.float32),
        ),
        compiler_params=pltpu.CompilerParams(
            dimension_semantics=("arbitrary", "arbitrary")),
    )(pg, pw, sg, sw)

    pred_warped = pred_warp[:, :, :hw].reshape(n, c, h, w)
    src_warped = src_warp[:, :, :hw].reshape(n, c, h, w)
    color_loss = loss_sum[0, 0] / float(n * c * h * w)
    return color_loss, pred_warped, src_warped


# ----------------------------------------------------------------------------
# MMLoss forward
# ----------------------------------------------------------------------------
def mm_loss_forward(pred, src, alphas, conv_w):
    """pred: (b, c, t-1, h, w)  src: (b, c, t, h, w)  alphas: (b,)"""
    if alphas.ndim != 1:
        # TODO(synk): spatial (b, h, w) alpha maps not supported by the tiled
        # mag-loss kernel; only per-batch scalar alphas are handled here.
        raise NotImplementedError("only per-batch scalar alphas supported")

    anchor = src[:, :, 0]                                  # (b, c, h, w)
    flow_pred, flow_src = compute_flows(anchor, pred, src[:, :, 1:], conv_w)

    mag_loss = mag_l1_loss(flow_pred, flow_src, alphas)
    color_loss, pred_warped, src_warped = warp_and_color_loss(
        pred, src[:, :, 1:], flow_pred, flow_src)

    info = {
        "pred_warped": pred_warped,
        "src_warped": src_warped,
        "flow_pred": flow_pred,
        "flow_src": flow_src,
    }
    return mag_loss, color_loss, info


if __name__ == "__main__":
    key = jax.random.PRNGKey(0)
    b, c, t, h, w = 2, 3, 3, 16, 16

    k1, k2, k3 = jax.random.split(key, 3)
    src = jax.random.normal(k1, (b, c, t, h, w), dtype=jnp.float32)
    pred = jax.random.normal(k2, (b, c, t - 1, h, w), dtype=jnp.float32)
    alphas = jnp.array([1.5, 2.5], dtype=jnp.float32)      # per-batch magnification

    # deterministic synthetic flow-head weights: (Cout=2, Cin=2c, 3, 3)
    conv_w = 0.1 * jax.random.normal(k3, (2, 2 * c, 3, 3), dtype=jnp.float32)

    mag_loss, color_loss, info = mm_loss_forward(pred, src, alphas, conv_w)
    jax.block_until_ready((mag_loss, color_loss, info))

    assert mag_loss.shape == () and color_loss.shape == ()
    assert bool(jnp.isfinite(mag_loss)) and bool(jnp.isfinite(color_loss))
    assert info["flow_pred"].shape == (b, t - 1, 2, h, w)
    assert info["flow_src"].shape == (b, t - 1, 2, h, w)
    assert info["pred_warped"].shape == (b * (t - 1), c, h, w)
    assert info["src_warped"].shape == (b * (t - 1), c, h, w)
    print("KERNEL_OK")
</pallas_src>

<mosaic_0001>
module attributes {stable_mosaic.version = 11 : i64} {
  func.func @_conv3x3_kernel(%arg0: i32, %arg1: memref<108xf32, #tpu.memory_space<smem>>, %arg2: memref<1x6x24x128xf32, #tpu.memory_space<vmem>>, %arg3: memref<1x2x24x128xf32, #tpu.memory_space<vmem>>) attributes {dimension_semantics = [#tpu.dimension_semantics<parallel>], iteration_bounds = array<i64: 8>, scalar_prefetch = 0 : i64, scratch_operands = 0 : i64, tpu.core_type = #tpu.core_type<tc>, window_params = [{transform_indices = @transform_0, window_bounds = array<i64: 108>}, {transform_indices = @transform_1, window_bounds = array<i64: 1, 6, 24, 128>}, {transform_indices = @transform_2, window_bounds = array<i64: 1, 2, 24, 128>}]} {
    %cst = arith.constant 0.000000e+00 : f32
    %0 = vector.broadcast %cst : f32 to vector<24x128xf32>
    %cst_0 = arith.constant 0.000000e+00 : f32
    %1 = vector.broadcast %cst_0 : f32 to vector<24x128xf32>
    %c0 = arith.constant 0 : index
    %c0_1 = arith.constant 0 : index
    %c0_2 = arith.constant 0 : index
    %c0_3 = arith.constant 0 : index
    %2 = vector.load %arg2[%c0, %c0_1, %c0_2, %c0_3] : memref<1x6x24x128xf32, #tpu.memory_space<vmem>>, vector<1x1x24x128xf32>
    %3 = vector.shape_cast %2 : vector<1x1x24x128xf32> to vector<24x128xf32>
    %c0_4 = arith.constant 0 : index
    %4 = memref.load %arg1[%c0_4] : memref<108xf32, #tpu.memory_space<smem>>
    %5 = vector.broadcast %4 : f32 to vector<24x128xf32>
    %6 = arith.mulf %5, %3 : vector<24x128xf32>
    %7 = arith.addf %0, %6 : vector<24x128xf32>
    %c54 = arith.constant 54 : index
    %8 = memref.load %arg1[%c54] : memref<108xf32, #tpu.memory_space<smem>>
    %9 = vector.broadcast %8 : f32 to vector<24x128xf32>
    %10 = arith.mulf %9, %3 : vector<24x128xf32>
    %11 = arith.addf %1, %10 : vector<24x128xf32>
    %c127_i32 = arith.constant 127 : i32
    %12 = tpu.dynamic_rotate %3 by %c127_i32 dim 1 : vector<24x128xf32>, i32 -> vector<24x128xf32>
    %c1 = arith.constant 1 : index
    %13 = memref.load %arg1[%c1] : memref<108xf32, #tpu.memory_space<smem>>
    %14 = vector.broadcast %13 : f32 to vector<24x128xf32>
    %15 = arith.mulf %14, %12 : vector<24x128xf32>
    %16 = arith.addf %7, %15 : vector<24x128xf32>
    %c55 = arith.constant 55 : index
    %17 = memref.load %arg1[%c55] : memref<108xf32, #tpu.memory_space<smem>>
    %18 = vector.broadcast %17 : f32 to vector<24x128xf32>
    %19 = arith.mulf %18, %12 : vector<24x128xf32>
    %20 = arith.addf %11, %19 : vector<24x128xf32>
    %c126_i32 = arith.constant 126 : i32
    %21 = tpu.dynamic_rotate %3 by %c126_i32 dim 1 : vector<24x128xf32>, i32 -> vector<24x128xf32>
    %c2 = arith.constant 2 : index
    %22 = memref.load %arg1[%c2] : memref<108xf32, #tpu.memory_space<smem>>
    %23 = vector.broadcast %22 : f32 to vector<24x128xf32>
    %24 = arith.mulf %23, %21 : vector<24x128xf32>
    %25 = arith.addf %16, %24 : vector<24x128xf32>
    %c56 = arith.constant 56 : index
    %26 = memref.load %arg1[%c56] : memref<108xf32, #tpu.memory_space<smem>>
    %27 = vector.broadcast %26 : f32 to vector<24x128xf32>
    %28 = arith.mulf %27, %21 : vector<24x128xf32>
    %29 = arith.addf %20, %28 : vector<24x128xf32>
    %c23_i32 = arith.constant 23 : i32
    %30 = tpu.dynamic_rotate %3 by %c23_i32 dim 0 : vector<24x128xf32>, i32 -> vector<24x128xf32>
    %c3 = arith.constant 3 : index
    %31 = memref.load %arg1[%c3] : memref<108xf32, #tpu.memory_space<smem>>
    %32 = vector.broadcast %31 : f32 to vector<24x128xf32>
    %33 = arith.mulf %32, %30 : vector<24x128xf32>
    %34 = arith.addf %25, %33 : vector<24x128xf32>
    %c57 = arith.constant 57 : index
    %35 = memref.load %arg1[%c57] : memref<108xf32, #tpu.memory_space<smem>>
    %36 = vector.broadcast %35 : f32 to vector<24x128xf32>
    %37 = arith.mulf %36, %30 : vector<24x128xf32>
    %38 = arith.addf %29, %37 : vector<24x128xf32>
    %c127_i32_5 = arith.constant 127 : i32
    %39 = tpu.dynamic_rotate %30 by %c127_i32_5 dim 1 : vector<24x128xf32>, i32 -> vector<24x128xf32>
    %c4 = arith.constant 4 : index
    %40 = memref.load %arg1[%c4] : memref<108xf32, #tpu.memory_space<smem>>
    %41 = vector.broadcast %40 : f32 to vector<24x128xf32>
    %42 = arith.mulf %41, %39 : vector<24x128xf32>
    %43 = arith.addf %34, %42 : vector<24x128xf32>
    %c58 = arith.constant 58 : index
    %44 = memref.load %arg1[%c58] : memref<108xf32, #tpu.memory_space<smem>>
    %45 = vector.broadcast %44 : f32 to vector<24x128xf32>
    %46 = arith.mulf %45, %39 : vector<24x128xf32>
    %47 = arith.addf %38, %46 : vector<24x128xf32>
    %c126_i32_6 = arith.constant 126 : i32
    %48 = tpu.dynamic_rotate %30 by %c126_i32_6 dim 1 : vector<24x128xf32>, i32 -> vector<24x128xf32>
    %c5 = arith.constant 5 : index
    %49 = memref.load %arg1[%c5] : memref<108xf32, #tpu.memory_space<smem>>
    %50 = vector.broadcast %49 : f32 to vector<24x128xf32>
    %51 = arith.mulf %50, %48 : vector<24x128xf32>
    %52 = arith.addf %43, %51 : vector<24x128xf32>
    %c59 = arith.constant 59 : index
    %53 = memref.load %arg1[%c59] : memref<108xf32, #tpu.memory_space<smem>>
    %54 = vector.broadcast %53 : f32 to vector<24x128xf32>
    %55 = arith.mulf %54, %48 : vector<24x128xf32>
    %56 = arith.addf %47, %55 : vector<24x128xf32>
    %c22_i32 = arith.constant 22 : i32
    %57 = tpu.dynamic_rotate %3 by %c22_i32 dim 0 : vector<24x128xf32>, i32 -> vector<24x128xf32>
    %c6 = arith.constant 6 : index
    %58 = memref.load %arg1[%c6] : memref<108xf32, #tpu.memory_space<smem>>
    %59 = vector.broadcast %58 : f32 to vector<24x128xf32>
    %60 = arith.mulf %59, %57 : vector<24x128xf32>
    %61 = arith.addf %52, %60 : vector<24x128xf32>
    %c60 = arith.constant 60 : index
    %62 = memref.load %arg1[%c60] : memref<108xf32, #tpu.memory_space<smem>>
    %63 = vector.broadcast %62 : f32 to vector<24x128xf32>
    %64 = arith.mulf %63, %57 : vector<24x128xf32>
    %65 = arith.addf %56, %64 : vector<24x128xf32>
    %c127_i32_7 = arith.constant 127 : i32
    %66 = tpu.dynamic_rotate %57 by %c127_i32_7 dim 1 : vector<24x128xf32>, i32 -> vector<24x128xf32>
    %c7 = arith.constant 7 : index
    %67 = memref.load %arg1[%c7] : memref<108xf32, #tpu.memory_space<smem>>
    %68 = vector.broadcast %67 : f32 to vector<24x128xf32>
    %69 = arith.mulf %68, %66 : vector<24x128xf32>
    %70 = arith.addf %61, %69 : vector<24x128xf32>
    %c61 = arith.constant 61 : index
    %71 = memref.load %arg1[%c61] : memref<108xf32, #tpu.memory_space<smem>>
    %72 = vector.broadcast %71 : f32 to vector<24x128xf32>
    %73 = arith.mulf %72, %66 : vector<24x128xf32>
    %74 = arith.addf %65, %73 : vector<24x128xf32>
    %c126_i32_8 = arith.constant 126 : i32
    %75 = tpu.dynamic_rotate %57 by %c126_i32_8 dim 1 : vector<24x128xf32>, i32 -> vector<24x128xf32>
    %c8 = arith.constant 8 : index
    %76 = memref.load %arg1[%c8] : memref<108xf32, #tpu.memory_space<smem>>
    %77 = vector.broadcast %76 : f32 to vector<24x128xf32>
    %78 = arith.mulf %77, %75 : vector<24x128xf32>
    %79 = arith.addf %70, %78 : vector<24x128xf32>
    %c62 = arith.constant 62 : index
    %80 = memref.load %arg1[%c62] : memref<108xf32, #tpu.memory_space<smem>>
    %81 = vector.broadcast %80 : f32 to vector<24x128xf32>
    %82 = arith.mulf %81, %75 : vector<24x128xf32>
    %83 = arith.addf %74, %82 : vector<24x128xf32>
    %c0_9 = arith.constant 0 : index
    %c1_10 = arith.constant 1 : index
    %c0_11 = arith.constant 0 : index
    %c0_12 = arith.constant 0 : index
    %84 = vector.load %arg2[%c0_9, %c1_10, %c0_11, %c0_12] : memref<1x6x24x128xf32, #tpu.memory_space<vmem>>, vector<1x1x24x128xf32>
    %85 = vector.shape_cast %84 : vector<1x1x24x128xf32> to vector<24x128xf32>
    %c9 = arith.constant 9 : index
    %86 = memref.load %arg1[%c9] : memref<108xf32, #tpu.memory_space<smem>>
    %87 = vector.broadcast %86 : f32 to vector<24x128xf32>
    %88 = arith.mulf %87, %85 : vector<24x128xf32>
    %89 = arith.addf %79, %88 : vector<24x128xf32>
    %c63 = arith.constant 63 : index
    %90 = memref.load %arg1[%c63] : memref<108xf32, #tpu.memory_space<smem>>
    %91 = vector.broadcast %90 : f32 to vector<24x128xf32>
    %92 = arith.mulf %91, %85 : vector<24x128xf32>
    %93 = arith.addf %83, %92 : vector<24x128xf32>
    %c127_i32_13 = arith.constant 127 : i32
    %94 = tpu.dynamic_rotate %85 by %c127_i32_13 dim 1 : vector<24x128xf32>, i32 -> vector<24x128xf32>
    %c10 = arith.constant 10 : index
    %95 = memref.load %arg1[%c10] : memref<108xf32, #tpu.memory_space<smem>>
    %96 = vector.broadcast %95 : f32 to vector<24x128xf32>
    %97 = arith.mulf %96, %94 : vector<24x128xf32>
    %98 = arith.addf %89, %97 : vector<24x128xf32>
    %c64 = arith.constant 64 : index
    %99 = memref.load %arg1[%c64] : memref<108xf32, #tpu.memory_space<smem>>
    %100 = vector.broadcast %99 : f32 to vector<24x128xf32>
    %101 = arith.mulf %100, %94 : vector<24x128xf32>
    %102 = arith.addf %93, %101 : vector<24x128xf32>
    %c126_i32_14 = arith.constant 126 : i32
    %103 = tpu.dynamic_rotate %85 by %c126_i32_14 dim 1 : vector<24x128xf32>, i32 -> vector<24x128xf32>
    %c11 = arith.constant 11 : index
    %104 = memref.load %arg1[%c11] : memref<108xf32, #tpu.memory_space<smem>>
    %105 = vector.broadcast %104 : f32 to vector<24x128xf32>
    %106 = arith.mulf %105, %103 : vector<24x128xf32>
    %107 = arith.addf %98, %106 : vector<24x128xf32>
    %c65 = arith.constant 65 : index
    %108 = memref.load %arg1[%c65] : memref<108xf32, #tpu.memory_space<smem>>
    %109 = vector.broadcast %108 : f32 to vector<24x128xf32>
    %110 = arith.mulf %109, %103 : vector<24x128xf32>
    %111 = arith.addf %102, %110 : vector<24x128xf32>
    %c23_i32_15 = arith.constant 23 : i32
    %112 = tpu.dynamic_rotate %85 by %c23_i32_15 dim 0 : vector<24x128xf32>, i32 -> vector<24x128xf32>
    %c12 = arith.constant 12 : index
    %113 = memref.load %arg1[%c12] : memref<108xf32, #tpu.memory_space<smem>>
    %114 = vector.broadcast %113 : f32 to vector<24x128xf32>
    %115 = arith.mulf %114, %112 : vector<24x128xf32>
    %116 = arith.addf %107, %115 : vector<24x128xf32>
    %c66 = arith.constant 66 : index
    %117 = memref.load %arg1[%c66] : memref<108xf32, #tpu.memory_space<smem>>
    %118 = vector.broadcast %117 : f32 to vector<24x128xf32>
    %119 = arith.mulf %118, %112 : vector<24x128xf32>
    %120 = arith.addf %111, %119 : vector<24x128xf32>
    %c127_i32_16 = arith.constant 127 : i32
    %121 = tpu.dynamic_rotate %112 by %c127_i32_16 dim 1 : vector<24x128xf32>, i32 -> vector<24x128xf32>
    %c13 = arith.constant 13 : index
    %122 = memref.load %arg1[%c13] : memref<108xf32, #tpu.memory_space<smem>>
    %123 = vector.broadcast %122 : f32 to vector<24x128xf32>
    %124 = arith.mulf %123, %121 : vector<24x128xf32>
    %125 = arith.addf %116, %124 : vector<24x128xf32>
    %c67 = arith.constant 67 : index
    %126 = memref.load %arg1[%c67] : memref<108xf32, #tpu.memory_space<smem>>
    %127 = vector.broadcast %126 : f32 to vector<24x128xf32>
    %128 = arith.mulf %127, %121 : vector<24x128xf32>
    %129 = arith.addf %120, %128 : vector<24x128xf32>
    %c126_i32_17 = arith.constant 126 : i32
    %130 = tpu.dynamic_rotate %112 by %c126_i32_17 dim 1 : vector<24x128xf32>, i32 -> vector<24x128xf32>
    %c14 = arith.constant 14 : index
    %131 = memref.load %arg1[%c14] : memref<108xf32, #tpu.memory_space<smem>>
    %132 = vector.broadcast %131 : f32 to vector<24x128xf32>
    %133 = arith.mulf %132, %130 : vector<24x128xf32>
    %134 = arith.addf %125, %133 : vector<24x128xf32>
    %c68 = arith.constant 68 : index
    %135 = memref.load %arg1[%c68] : memref<108xf32, #tpu.memory_space<smem>>
    %136 = vector.broadcast %135 : f32 to vector<24x128xf32>
    %137 = arith.mulf %136, %130 : vector<24x128xf32>
    %138 = arith.addf %129, %137 : vector<24x128xf32>
    %c22_i32_18 = arith.constant 22 : i32
    %139 = tpu.dynamic_rotate %85 by %c22_i32_18 dim 0 : vector<24x128xf32>, i32 -> vector<24x128xf32>
    %c15 = arith.constant 15 : index
    %140 = memref.load %arg1[%c15] : memref<108xf32, #tpu.memory_space<smem>>
    %141 = vector.broadcast %140 : f32 to vector<24x128xf32>
    %142 = arith.mulf %141, %139 : vector<24x128xf32>
    %143 = arith.addf %134, %142 : vector<24x128xf32>
    %c69 = arith.constant 69 : index
    %144 = memref.load %arg1[%c69] : memref<108xf32, #tpu.memory_space<smem>>
    %145 = vector.broadcast %144 : f32 to vector<24x128xf32>
    %146 = arith.mulf %145, %139 : vector<24x128xf32>
    %147 = arith.addf %138, %146 : vector<24x128xf32>
    %c127_i32_19 = arith.constant 127 : i32
    %148 = tpu.dynamic_rotate %139 by %c127_i32_19 dim 1 : vector<24x128xf32>, i32 -> vector<24x128xf32>
    %c16 = arith.constant 16 : index
    %149 = memref.load %arg1[%c16] : memref<108xf32, #tpu.memory_space<smem>>
    %150 = vector.broadcast %149 : f32 to vector<24x128xf32>
    %151 = arith.mulf %150, %148 : vector<24x128xf32>
    %152 = arith.addf %143, %151 : vector<24x128xf32>
    %c70 = arith.constant 70 : index
    %153 = memref.load %arg1[%c70] : memref<108xf32, #tpu.memory_space<smem>>
    %154 = vector.broadcast %153 : f32 to vector<24x128xf32>
    %155 = arith.mulf %154, %148 : vector<24x128xf32>
    %156 = arith.addf %147, %155 : vector<24x128xf32>
    %c126_i32_20 = arith.constant 126 : i32
    %157 = tpu.dynamic_rotate %139 by %c126_i32_20 dim 1 : vector<24x128xf32>, i32 -> vector<24x128xf32>
    %c17 = arith.constant 17 : index
    %158 = memref.load %arg1[%c17] : memref<108xf32, #tpu.memory_space<smem>>
    %159 = vector.broadcast %158 : f32 to vector<24x128xf32>
    %160 = arith.mulf %159, %157 : vector<24x128xf32>
    %161 = arith.addf %152, %160 : vector<24x128xf32>
    %c71 = arith.constant 71 : index
    %162 = memref.load %arg1[%c71] : memref<108xf32, #tpu.memory_space<smem>>
    %163 = vector.broadcast %162 : f32 to vector<24x128xf32>
    %164 = arith.mulf %163, %157 : vector<24x128xf32>
    %165 = arith.addf %156, %164 : vector<24x128xf32>
    %c0_21 = arith.constant 0 : index
    %c2_22 = arith.constant 2 : index
    %c0_23 = arith.constant 0 : index
    %c0_24 = arith.constant 0 : index
    %166 = vector.load %arg2[%c0_21, %c2_22, %c0_23, %c0_24] : memref<1x6x24x128xf32, #tpu.memory_space<vmem>>, vector<1x1x24x128xf32>
    %167 = vector.shape_cast %166 : vector<1x1x24x128xf32> to vector<24x128xf32>
    %c18 = arith.constant 18 : index
    %168 = memref.load %arg1[%c18] : memref<108xf32, #tpu.memory_space<smem>>
    %169 = vector.broadcast %168 : f32 to vector<24x128xf32>
    %170 = arith.mulf %169, %167 : vector<24x128xf32>
    %171 = arith.addf %161, %170 : vector<24x128xf32>
    %c72 = arith.constant 72 : index
    %172 = memref.load %arg1[%c72] : memref<108xf32, #tpu.memory_space<smem>>
    %173 = vector.broadcast %172 : f32 to vector<24x128xf32>
    %174 = arith.mulf %173, %167 : vector<24x128xf32>
    %175 = arith.addf %165, %174 : vector<24x128xf32>
    %c127_i32_25 = arith.constant 127 : i32
    %176 = tpu.dynamic_rotate %167 by %c127_i32_25 dim 1 : vector<24x128xf32>, i32 -> vector<24x128xf32>
    %c19 = arith.constant 19 : index
    %177 = memref.load %arg1[%c19] : memref<108xf32, #tpu.memory_space<smem>>
    %178 = vector.broadcast %177 : f32 to vector<24x128xf32>
    %179 = arith.mulf %178, %176 : vector<24x128xf32>
    %180 = arith.addf %171, %179 : vector<24x128xf32>
    %c73 = arith.constant 73 : index
    %181 = memref.load %arg1[%c73] : memref<108xf32, #tpu.memory_space<smem>>
    %182 = vector.broadcast %181 : f32 to vector<24x128xf32>
    %183 = arith.mulf %182, %176 : vector<24x128xf32>
    %184 = arith.addf %175, %183 : vector<24x128xf32>
    %c126_i32_26 = arith.constant 126 : i32
    %185 = tpu.dynamic_rotate %167 by %c126_i32_26 dim 1 : vector<24x128xf32>, i32 -> vector<24x128xf32>
    %c20 = arith.constant 20 : index
    %186 = memref.load %arg1[%c20] : memref<108xf32, #tpu.memory_space<smem>>
    %187 = vector.broadcast %186 : f32 to vector<24x128xf32>
    %188 = arith.mulf %187, %185 : vector<24x128xf32>
    %189 = arith.addf %180, %188 : vector<24x128xf32>
    %c74 = arith.constant 74 : index
    %190 = memref.load %arg1[%c74] : memref<108xf32, #tpu.memory_space<smem>>
    %191 = vector.broadcast %190 : f32 to vector<24x128xf32>
    %192 = arith.mulf %191, %185 : vector<24x128xf32>
    %193 = arith.addf %184, %192 : vector<24x128xf32>
    %c23_i32_27 = arith.constant 23 : i32
    %194 = tpu.dynamic_rotate %167 by %c23_i32_27 dim 0 : vector<24x128xf32>, i32 -> vector<24x128xf32>
    %c21 = arith.constant 21 : index
    %195 = memref.load %arg1[%c21] : memref<108xf32, #tpu.memory_space<smem>>
    %196 = vector.broadcast %195 : f32 to vector<24x128xf32>
    %197 = arith.mulf %196, %194 : vector<24x128xf32>
    %198 = arith.addf %189, %197 : vector<24x128xf32>
    %c75 = arith.constant 75 : index
    %199 = memref.load %arg1[%c75] : memref<108xf32, #tpu.memory_space<smem>>
    %200 = vector.broadcast %199 : f32 to vector<24x128xf32>
    %201 = arith.mulf %200, %194 : vector<24x128xf32>
    %202 = arith.addf %193, %201 : vector<24x128xf32>
    %c127_i32_28 = arith.constant 127 : i32
    %203 = tpu.dynamic_rotate %194 by %c127_i32_28 dim 1 : vector<24x128xf32>, i32 -> vector<24x128xf32>
    %c22 = arith.constant 22 : index
    %204 = memref.load %arg1[%c22] : memref<108xf32, #tpu.memory_space<smem>>
    %205 = vector.broadcast %204 : f32 to vector<24x128xf32>
    %206 = arith.mulf %205, %203 : vector<24x128xf32>
    %207 = arith.addf %198, %206 : vector<24x128xf32>
    %c76 = arith.constant 76 : index
    %208 = memref.load %arg1[%c76] : memref<108xf32, #tpu.memory_space<smem>>
    %209 = vector.broadcast %208 : f32 to vector<24x128xf32>
    %210 = arith.mulf %209, %203 : vector<24x128xf32>
    %211 = arith.addf %202, %210 : vector<24x128xf32>
    %c126_i32_29 = arith.constant 126 : i32
    %212 = tpu.dynamic_rotate %194 by %c126_i32_29 dim 1 : vector<24x128xf32>, i32 -> vector<24x128xf32>
    %c23 = arith.constant 23 : index
    %213 = memref.load %arg1[%c23] : memref<108xf32, #tpu.memory_space<smem>>
    %214 = vector.broadcast %213 : f32 to vector<24x128xf32>
    %215 = arith.mulf %214, %212 : vector<24x128xf32>
    %216 = arith.addf %207, %215 : vector<24x128xf32>
    %c77 = arith.constant 77 : index
    %217 = memref.load %arg1[%c77] : memref<108xf32, #tpu.memory_space<smem>>
    %218 = vector.broadcast %217 : f32 to vector<24x128xf32>
    %219 = arith.mulf %218, %212 : vector<24x128xf32>
    %220 = arith.addf %211, %219 : vector<24x128xf32>
    %c22_i32_30 = arith.constant 22 : i32
    %221 = tpu.dynamic_rotate %167 by %c22_i32_30 dim 0 : vector<24x128xf32>, i32 -> vector<24x128xf32>
    %c24 = arith.constant 24 : index
    %222 = memref.load %arg1[%c24] : memref<108xf32, #tpu.memory_space<smem>>
    %223 = vector.broadcast %222 : f32 to vector<24x128xf32>
    %224 = arith.mulf %223, %221 : vector<24x128xf32>
    %225 = arith.addf %216, %224 : vector<24x128xf32>
    %c78 = arith.constant 78 : index
    %226 = memref.load %arg1[%c78] : memref<108xf32, #tpu.memory_space<smem>>
    %227 = vector.broadcast %226 : f32 to vector<24x128xf32>
    %228 = arith.mulf %227, %221 : vector<24x128xf32>
    %229 = arith.addf %220, %228 : vector<24x128xf32>
    %c127_i32_31 = arith.constant 127 : i32
    %230 = tpu.dynamic_rotate %221 by %c127_i32_31 dim 1 : vector<24x128xf32>, i32 -> vector<24x128xf32>
    %c25 = arith.constant 25 : index
    %231 = memref.load %arg1[%c25] : memref<108xf32, #tpu.memory_space<smem>>
    %232 = vector.broadcast %231 : f32 to vector<24x128xf32>
    %233 = arith.mulf %232, %230 : vector<24x128xf32>
    %234 = arith.addf %225, %233 : vector<24x128xf32>
    %c79 = arith.constant 79 : index
    %235 = memref.load %arg1[%c79] : memref<108xf32, #tpu.memory_space<smem>>
    %236 = vector.broadcast %235 : f32 to vector<24x128xf32>
    %237 = arith.mulf %236, %230 : vector<24x128xf32>
    %238 = arith.addf %229, %237 : vector<24x128xf32>
    %c126_i32_32 = arith.constant 126 : i32
    %239 = tpu.dynamic_rotate %221 by %c126_i32_32 dim 1 : vector<24x128xf32>, i32 -> vector<24x128xf32>
    %c26 = arith.constant 26 : index
    %240 = memref.load %arg1[%c26] : memref<108xf32, #tpu.memory_space<smem>>
    %241 = vector.broadcast %240 : f32 to vector<24x128xf32>
    %242 = arith.mulf %241, %239 : vector<24x128xf32>
    %243 = arith.addf %234, %242 : vector<24x128xf32>
    %c80 = arith.constant 80 : index
    %244 = memref.load %arg1[%c80] : memref<108xf32, #tpu.memory_space<smem>>
    %245 = vector.broadcast %244 : f32 to vector<24x128xf32>
    %246 = arith.mulf %245, %239 : vector<24x128xf32>
    %247 = arith.addf %238, %246 : vector<24x128xf32>
    %c0_33 = arith.constant 0 : index
    %c3_34 = arith.constant 3 : index
    %c0_35 = arith.constant 0 : index
    %c0_36 = arith.constant 0 : index
    %248 = vector.load %arg2[%c0_33, %c3_34, %c0_35, %c0_36] : memref<1x6x24x128xf32, #tpu.memory_space<vmem>>, vector<1x1x24x128xf32>
    %249 = vector.shape_cast %248 : vector<1x1x24x128xf32> to vector<24x128xf32>
    %c27 = arith.constant 27 : index
    %250 = memref.load %arg1[%c27] : memref<108xf32, #tpu.memory_space<smem>>
    %251 = vector.broadcast %250 : f32 to vector<24x128xf32>
    %252 = arith.mulf %251, %249 : vector<24x128xf32>
    %253 = arith.addf %243, %252 : vector<24x128xf32>
    %c81 = arith.constant 81 : index
    %254 = memref.load %arg1[%c81] : memref<108xf32, #tpu.memory_space<smem>>
    %255 = vector.broadcast %254 : f32 to vector<24x128xf32>
    %256 = arith.mulf %255, %249 : vector<24x128xf32>
    %257 = arith.addf %247, %256 : vector<24x128xf32>
    %c127_i32_37 = arith.constant 127 : i32
    %258 = tpu.dynamic_rotate %249 by %c127_i32_37 dim 1 : vector<24x128xf32>, i32 -> vector<24x128xf32>
    %c28 = arith.constant 28 : index
    %259 = memref.load %arg1[%c28] : memref<108xf32, #tpu.memory_space<smem>>
    %260 = vector.broadcast %259 : f32 to vector<24x128xf32>
    %261 = arith.mulf %260, %258 : vector<24x128xf32>
    %262 = arith.addf %253, %261 : vector<24x128xf32>
    %c82 = arith.constant 82 : index
    %263 = memref.load %arg1[%c82] : memref<108xf32, #tpu.memory_space<smem>>
    %264 = vector.broadcast %263 : f32 to vector<24x128xf32>
    %265 = arith.mulf %264, %258 : vector<24x128xf32>
    %266 = arith.addf %257, %265 : vector<24x128xf32>
    %c126_i32_38 = arith.constant 126 : i32
    %267 = tpu.dynamic_rotate %249 by %c126_i32_38 dim 1 : vector<24x128xf32>, i32 -> vector<24x128xf32>
    %c29 = arith.constant 29 : index
    %268 = memref.load %arg1[%c29] : memref<108xf32, #tpu.memory_space<smem>>
    %269 = vector.broadcast %268 : f32 to vector<24x128xf32>
    %270 = arith.mulf %269, %267 : vector<24x128xf32>
    %271 = arith.addf %262, %270 : vector<24x128xf32>
    %c83 = arith.constant 83 : index
    %272 = memref.load %arg1[%c83] : memref<108xf32, #tpu.memory_space<smem>>
    %273 = vector.broadcast %272 : f32 to vector<24x128xf32>
    %274 = arith.mulf %273, %267 : vector<24x128xf32>
    %275 = arith.addf %266, %274 : vector<24x128xf32>
    %c23_i32_39 = arith.constant 23 : i32
    %276 = tpu.dynamic_rotate %249 by %c23_i32_39 dim 0 : vector<24x128xf32>, i32 -> vector<24x128xf32>
    %c30 = arith.constant 30 : index
    %277 = memref.load %arg1[%c30] : memref<108xf32, #tpu.memory_space<smem>>
    %278 = vector.broadcast %277 : f32 to vector<24x128xf32>
    %279 = arith.mulf %278, %276 : vector<24x128xf32>
    %280 = arith.addf %271, %279 : vector<24x128xf32>
    %c84 = arith.constant 84 : index
    %281 = memref.load %arg1[%c84] : memref<108xf32, #tpu.memory_space<smem>>
    %282 = vector.broadcast %281 : f32 to vector<24x128xf32>
    %283 = arith.mulf %282, %276 : vector<24x128xf32>
    %284 = arith.addf %275, %283 : vector<24x128xf32>
    %c127_i32_40 = arith.constant 127 : i32
    %285 = tpu.dynamic_rotate %276 by %c127_i32_40 dim 1 : vector<24x128xf32>, i32 -> vector<24x128xf32>
    %c31 = arith.constant 31 : index
    %286 = memref.load %arg1[%c31] : memref<108xf32, #tpu.memory_space<smem>>
    %287 = vector.broadcast %286 : f32 to vector<24x128xf32>
    %288 = arith.mulf %287, %285 : vector<24x128xf32>
    %289 = arith.addf %280, %288 : vector<24x128xf32>
    %c85 = arith.constant 85 : index
    %290 = memref.load %arg1[%c85] : memref<108xf32, #tpu.memory_space<smem>>
    %291 = vector.broadcast %290 : f32 to vector<24x128xf32>
    %292 = arith.mulf %291, %285 : vector<24x128xf32>
    %293 = arith.addf %284, %292 : vector<24x128xf32>
    %c126_i32_41 = arith.constant 126 : i32
    %294 = tpu.dynamic_rotate %276 by %c126_i32_41 dim 1 : vector<24x128xf32>, i32 -> vector<24x128xf32>
    %c32 = arith.constant 32 : index
    %295 = memref.load %arg1[%c32] : memref<108xf32, #tpu.memory_space<smem>>
    %296 = vector.broadcast %295 : f32 to vector<24x128xf32>
    %297 = arith.mulf %296, %294 : vector<24x128xf32>
    %298 = arith.addf %289, %297 : vector<24x128xf32>
    %c86 = arith.constant 86 : index
    %299 = memref.load %arg1[%c86] : memref<108xf32, #tpu.memory_space<smem>>
    %300 = vector.broadcast %299 : f32 to vector<24x128xf32>
    %301 = arith.mulf %300, %294 : vector<24x128xf32>
    %302 = arith.addf %293, %301 : vector<24x128xf32>
    %c22_i32_42 = arith.constant 22 : i32
    %303 = tpu.dynamic_rotate %249 by %c22_i32_42 dim 0 : vector<24x128xf32>, i32 -> vector<24x128xf32>
    %c33 = arith.constant 33 : index
    %304 = memref.load %arg1[%c33] : memref<108xf32, #tpu.memory_space<smem>>
    %305 = vector.broadcast %304 : f32 to vector<24x128xf32>
    %306 = arith.mulf %305, %303 : vector<24x128xf32>
    %307 = arith.addf %298, %306 : vector<24x128xf32>
    %c87 = arith.constant 87 : index
    %308 = memref.load %arg1[%c87] : memref<108xf32, #tpu.memory_space<smem>>
    %309 = vector.broadcast %308 : f32 to vector<24x128xf32>
    %310 = arith.mulf %309, %303 : vector<24x128xf32>
    %311 = arith.addf %302, %310 : vector<24x128xf32>
    %c127_i32_43 = arith.constant 127 : i32
    %312 = tpu.dynamic_rotate %303 by %c127_i32_43 dim 1 : vector<24x128xf32>, i32 -> vector<24x128xf32>
    %c34 = arith.constant 34 : index
    %313 = memref.load %arg1[%c34] : memref<108xf32, #tpu.memory_space<smem>>
    %314 = vector.broadcast %313 : f32 to vector<24x128xf32>
    %315 = arith.mulf %314, %312 : vector<24x128xf32>
    %316 = arith.addf %307, %315 : vector<24x128xf32>
    %c88 = arith.constant 88 : index
    %317 = memref.load %arg1[%c88] : memref<108xf32, #tpu.memory_space<smem>>
    %318 = vector.broadcast %317 : f32 to vector<24x128xf32>
    %319 = arith.mulf %318, %312 : vector<24x128xf32>
    %320 = arith.addf %311, %319 : vector<24x128xf32>
    %c126_i32_44 = arith.constant 126 : i32
    %321 = tpu.dynamic_rotate %303 by %c126_i32_44 dim 1 : vector<24x128xf32>, i32 -> vector<24x128xf32>
    %c35 = arith.constant 35 : index
    %322 = memref.load %arg1[%c35] : memref<108xf32, #tpu.memory_space<smem>>
    %323 = vector.broadcast %322 : f32 to vector<24x128xf32>
    %324 = arith.mulf %323, %321 : vector<24x128xf32>
    %325 = arith.addf %316, %324 : vector<24x128xf32>
    %c89 = arith.constant 89 : index
    %326 = memref.load %arg1[%c89] : memref<108xf32, #tpu.memory_space<smem>>
    %327 = vector.broadcast %326 : f32 to vector<24x128xf32>
    %328 = arith.mulf %327, %321 : vector<24x128xf32>
    %329 = arith.addf %320, %328 : vector<24x128xf32>
    %c0_45 = arith.constant 0 : index
    %c4_46 = arith.constant 4 : index
    %c0_47 = arith.constant 0 : index
    %c0_48 = arith.constant 0 : index
    %330 = vector.load %arg2[%c0_45, %c4_46, %c0_47, %c0_48] : memref<1x6x24x128xf32, #tpu.memory_space<vmem>>, vector<1x1x24x128xf32>
    %331 = vector.shape_cast %330 : vector<1x1x24x128xf32> to vector<24x128xf32>
    %c36 = arith.constant 36 : index
    %332 = memref.load %arg1[%c36] : memref<108xf32, #tpu.memory_space<smem>>
    %333 = vector.broadcast %332 : f32 to vector<24x128xf32>
    %334 = arith.mulf %333, %331 : vector<24x128xf32>
    %335 = arith.addf %325, %334 : vector<24x128xf32>
    %c90 = arith.constant 90 : index
    %336 = memref.load %arg1[%c90] : memref<108xf32, #tpu.memory_space<smem>>
    %337 = vector.broadcast %336 : f32 to vector<24x128xf32>
    %338 = arith.mulf %337, %331 : vector<24x128xf32>
    %339 = arith.addf %329, %338 : vector<24x128xf32>
    %c127_i32_49 = arith.constant 127 : i32
    %340 = tpu.dynamic_rotate %331 by %c127_i32_49 dim 1 : vector<24x128xf32>, i32 -> vector<24x128xf32>
    %c37 = arith.constant 37 : index
    %341 = memref.load %arg1[%c37] : memref<108xf32, #tpu.memory_space<smem>>
    %342 = vector.broadcast %341 : f32 to vector<24x128xf32>
    %343 = arith.mulf %342, %340 : vector<24x128xf32>
    %344 = arith.addf %335, %343 : vector<24x128xf32>
    %c91 = arith.constant 91 : index
    %345 = memref.load %arg1[%c91] : memref<108xf32, #tpu.memory_space<smem>>
    %346 = vector.broadcast %345 : f32 to vector<24x128xf32>
    %347 = arith.mulf %346, %340 : vector<24x128xf32>
    %348 = arith.addf %339, %347 : vector<24x128xf32>
    %c126_i32_50 = arith.constant 126 : i32
    %349 = tpu.dynamic_rotate %331 by %c126_i32_50 dim 1 : vector<24x128xf32>, i32 -> vector<24x128xf32>
    %c38 = arith.constant 38 : index
    %350 = memref.load %arg1[%c38] : memref<108xf32, #tpu.memory_space<smem>>
    %351 = vector.broadcast %350 : f32 to vector<24x128xf32>
    %352 = arith.mulf %351, %349 : vector<24x128xf32>
    %353 = arith.addf %344, %352 : vector<24x128xf32>
    %c92 = arith.constant 92 : index
    %354 = memref.load %arg1[%c92] : memref<108xf32, #tpu.memory_space<smem>>
    %355 = vector.broadcast %354 : f32 to vector<24x128xf32>
    %356 = arith.mulf %355, %349 : vector<24x128xf32>
    %357 = arith.addf %348, %356 : vector<24x128xf32>
    %c23_i32_51 = arith.constant 23 : i32
    %358 = tpu.dynamic_rotate %331 by %c23_i32_51 dim 0 : vector<24x128xf32>, i32 -> vector<24x128xf32>
    %c39 = arith.constant 39 : index
    %359 = memref.load %arg1[%c39] : memref<108xf32, #tpu.memory_space<smem>>
    %360 = vector.broadcast %359 : f32 to vector<24x128xf32>
    %361 = arith.mulf %360, %358 : vector<24x128xf32>
    %362 = arith.addf %353, %361 : vector<24x128xf32>
    %c93 = arith.constant 93 : index
    %363 = memref.load %arg1[%c93] : memref<108xf32, #tpu.memory_space<smem>>
    %364 = vector.broadcast %363 : f32 to vector<24x128xf32>
    %365 = arith.mulf %364, %358 : vector<24x128xf32>
    %366 = arith.addf %357, %365 : vector<24x128xf32>
    %c127_i32_52 = arith.constant 127 : i32
    %367 = tpu.dynamic_rotate %358 by %c127_i32_52 dim 1 : vector<24x128xf32>, i32 -> vector<24x128xf32>
    %c40 = arith.constant 40 : index
    %368 = memref.load %arg1[%c40] : memref<108xf32, #tpu.memory_space<smem>>
    %369 = vector.broadcast %368 : f32 to vector<24x128xf32>
    %370 = arith.mulf %369, %367 : vector<24x128xf32>
    %371 = arith.addf %362, %370 : vector<24x128xf32>
    %c94 = arith.constant 94 : index
    %372 = memref.load %arg1[%c94] : memref<108xf32, #tpu.memory_space<smem>>
    %373 = vector.broadcast %372 : f32 to vector<24x128xf32>
    %374 = arith.mulf %373, %367 : vector<24x128xf32>
    %375 = arith.addf %366, %374 : vector<24x128xf32>
    %c126_i32_53 = arith.constant 126 : i32
    %376 = tpu.dynamic_rotate %358 by %c126_i32_53 dim 1 : vector<24x128xf32>, i32 -> vector<24x128xf32>
    %c41 = arith.constant 41 : index
    %377 = memref.load %arg1[%c41] : memref<108xf32, #tpu.memory_space<smem>>
    %378 = vector.broadcast %377 : f32 to vector<24x128xf32>
    %379 = arith.mulf %378, %376 : vector<24x128xf32>
    %380 = arith.addf %371, %379 : vector<24x128xf32>
    %c95 = arith.constant 95 : index
    %381 = memref.load %arg1[%c95] : memref<108xf32, #tpu.memory_space<smem>>
    %382 = vector.broadcast %381 : f32 to vector<24x128xf32>
    %383 = arith.mulf %382, %376 : vector<24x128xf32>
    %384 = arith.addf %375, %383 : vector<24x128xf32>
    %c22_i32_54 = arith.constant 22 : i32
    %385 = tpu.dynamic_rotate %331 by %c22_i32_54 dim 0 : vector<24x128xf32>, i32 -> vector<24x128xf32>
    %c42 = arith.constant 42 : index
    %386 = memref.load %arg1[%c42] : memref<108xf32, #tpu.memory_space<smem>>
    %387 = vector.broadcast %386 : f32 to vector<24x128xf32>
    %388 = arith.mulf %387, %385 : vector<24x128xf32>
    %389 = arith.addf %380, %388 : vector<24x128xf32>
    %c96 = arith.constant 96 : index
    %390 = memref.load %arg1[%c96] : memref<108xf32, #tpu.memory_space<smem>>
    %391 = vector.broadcast %390 : f32 to vector<24x128xf32>
    %392 = arith.mulf %391, %385 : vector<24x128xf32>
    %393 = arith.addf %384, %392 : vector<24x128xf32>
    %c127_i32_55 = arith.constant 127 : i32
    %394 = tpu.dynamic_rotate %385 by %c127_i32_55 dim 1 : vector<24x128xf32>, i32 -> vector<24x128xf32>
    %c43 = arith.constant 43 : index
    %395 = memref.load %arg1[%c43] : memref<108xf32, #tpu.memory_space<smem>>
    %396 = vector.broadcast %395 : f32 to vector<24x128xf32>
    %397 = arith.mulf %396, %394 : vector<24x128xf32>
    %398 = arith.addf %389, %397 : vector<24x128xf32>
    %c97 = arith.constant 97 : index
    %399 = memref.load %arg1[%c97] : memref<108xf32, #tpu.memory_space<smem>>
    %400 = vector.broadcast %399 : f32 to vector<24x128xf32>
    %401 = arith.mulf %400, %394 : vector<24x128xf32>
    %402 = arith.addf %393, %401 : vector<24x128xf32>
    %c126_i32_56 = arith.constant 126 : i32
    %403 = tpu.dynamic_rotate %385 by %c126_i32_56 dim 1 : vector<24x128xf32>, i32 -> vector<24x128xf32>
    %c44 = arith.constant 44 : index
    %404 = memref.load %arg1[%c44] : memref<108xf32, #tpu.memory_space<smem>>
    %405 = vector.broadcast %404 : f32 to vector<24x128xf32>
    %406 = arith.mulf %405, %403 : vector<24x128xf32>
    %407 = arith.addf %398, %406 : vector<24x128xf32>
    %c98 = arith.constant 98 : index
    %408 = memref.load %arg1[%c98] : memref<108xf32, #tpu.memory_space<smem>>
    %409 = vector.broadcast %408 : f32 to vector<24x128xf32>
    %410 = arith.mulf %409, %403 : vector<24x128xf32>
    %411 = arith.addf %402, %410 : vector<24x128xf32>
    %c0_57 = arith.constant 0 : index
    %c5_58 = arith.constant 5 : index
    %c0_59 = arith.constant 0 : index
    %c0_60 = arith.constant 0 : index
    %412 = vector.load %arg2[%c0_57, %c5_58, %c0_59, %c0_60] : memref<1x6x24x128xf32, #tpu.memory_space<vmem>>, vector<1x1x24x128xf32>
    %413 = vector.shape_cast %412 : vector<1x1x24x128xf32> to vector<24x128xf32>
    %c45 = arith.constant 45 : index
    %414 = memref.load %arg1[%c45] : memref<108xf32, #tpu.memory_space<smem>>
    %415 = vector.broadcast %414 : f32 to vector<24x128xf32>
    %416 = arith.mulf %415, %413 : vector<24x128xf32>
    %417 = arith.addf %407, %416 : vector<24x128xf32>
    %c99 = arith.constant 99 : index
    %418 = memref.load %arg1[%c99] : memref<108xf32, #tpu.memory_space<smem>>
    %419 = vector.broadcast %418 : f32 to vector<24x128xf32>
    %420 = arith.mulf %419, %413 : vector<24x128xf32>
    %421 = arith.addf %411, %420 : vector<24x128xf32>
    %c127_i32_61 = arith.constant 127 : i32
    %422 = tpu.dynamic_rotate %413 by %c127_i32_61 dim 1 : vector<24x128xf32>, i32 -> vector<24x128xf32>
    %c46 = arith.constant 46 : index
    %423 = memref.load %arg1[%c46] : memref<108xf32, #tpu.memory_space<smem>>
    %424 = vector.broadcast %423 : f32 to vector<24x128xf32>
    %425 = arith.mulf %424, %422 : vector<24x128xf32>
    %426 = arith.addf %417, %425 : vector<24x128xf32>
    %c100 = arith.constant 100 : index
    %427 = memref.load %arg1[%c100] : memref<108xf32, #tpu.memory_space<smem>>
    %428 = vector.broadcast %427 : f32 to vector<24x128xf32>
    %429 = arith.mulf %428, %422 : vector<24x128xf32>
    %430 = arith.addf %421, %429 : vector<24x128xf32>
    %c126_i32_62 = arith.constant 126 : i32
    %431 = tpu.dynamic_rotate %413 by %c126_i32_62 dim 1 : vector<24x128xf32>, i32 -> vector<24x128xf32>
    %c47 = arith.constant 47 : index
    %432 = memref.load %arg1[%c47] : memref<108xf32, #tpu.memory_space<smem>>
    %433 = vector.broadcast %432 : f32 to vector<24x128xf32>
    %434 = arith.mulf %433, %431 : vector<24x128xf32>
    %435 = arith.addf %426, %434 : vector<24x128xf32>
    %c101 = arith.constant 101 : index
    %436 = memref.load %arg1[%c101] : memref<108xf32, #tpu.memory_space<smem>>
    %437 = vector.broadcast %436 : f32 to vector<24x128xf32>
    %438 = arith.mulf %437, %431 : vector<24x128xf32>
    %439 = arith.addf %430, %438 : vector<24x128xf32>
    %c23_i32_63 = arith.constant 23 : i32
    %440 = tpu.dynamic_rotate %413 by %c23_i32_63 dim 0 : vector<24x128xf32>, i32 -> vector<24x128xf32>
    %c48 = arith.constant 48 : index
    %441 = memref.load %arg1[%c48] : memref<108xf32, #tpu.memory_space<smem>>
    %442 = vector.broadcast %441 : f32 to vector<24x128xf32>
    %443 = arith.mulf %442, %440 : vector<24x128xf32>
    %444 = arith.addf %435, %443 : vector<24x128xf32>
    %c102 = arith.constant 102 : index
    %445 = memref.load %arg1[%c102] : memref<108xf32, #tpu.memory_space<smem>>
    %446 = vector.broadcast %445 : f32 to vector<24x128xf32>
    %447 = arith.mulf %446, %440 : vector<24x128xf32>
    %448 = arith.addf %439, %447 : vector<24x128xf32>
    %c127_i32_64 = arith.constant 127 : i32
    %449 = tpu.dynamic_rotate %440 by %c127_i32_64 dim 1 : vector<24x128xf32>, i32 -> vector<24x128xf32>
    %c49 = arith.constant 49 : index
    %450 = memref.load %arg1[%c49] : memref<108xf32, #tpu.memory_space<smem>>
    %451 = vector.broadcast %450 : f32 to vector<24x128xf32>
    %452 = arith.mulf %451, %449 : vector<24x128xf32>
    %453 = arith.addf %444, %452 : vector<24x128xf32>
    %c103 = arith.constant 103 : index
    %454 = memref.load %arg1[%c103] : memref<108xf32, #tpu.memory_space<smem>>
    %455 = vector.broadcast %454 : f32 to vector<24x128xf32>
    %456 = arith.mulf %455, %449 : vector<24x128xf32>
    %457 = arith.addf %448, %456 : vector<24x128xf32>
    %c126_i32_65 = arith.constant 126 : i32
    %458 = tpu.dynamic_rotate %440 by %c126_i32_65 dim 1 : vector<24x128xf32>, i32 -> vector<24x128xf32>
    %c50 = arith.constant 50 : index
    %459 = memref.load %arg1[%c50] : memref<108xf32, #tpu.memory_space<smem>>
    %460 = vector.broadcast %459 : f32 to vector<24x128xf32>
    %461 = arith.mulf %460, %458 : vector<24x128xf32>
    %462 = arith.addf %453, %461 : vector<24x128xf32>
    %c104 = arith.constant 104 : index
    %463 = memref.load %arg1[%c104] : memref<108xf32, #tpu.memory_space<smem>>
    %464 = vector.broadcast %463 : f32 to vector<24x128xf32>
    %465 = arith.mulf %464, %458 : vector<24x128xf32>
    %466 = arith.addf %457, %465 : vector<24x128xf32>
    %c22_i32_66 = arith.constant 22 : i32
    %467 = tpu.dynamic_rotate %413 by %c22_i32_66 dim 0 : vector<24x128xf32>, i32 -> vector<24x128xf32>
    %c51 = arith.constant 51 : index
    %468 = memref.load %arg1[%c51] : memref<108xf32, #tpu.memory_space<smem>>
    %469 = vector.broadcast %468 : f32 to vector<24x128xf32>
    %470 = arith.mulf %469, %467 : vector<24x128xf32>
    %471 = arith.addf %462, %470 : vector<24x128xf32>
    %c105 = arith.constant 105 : index
    %472 = memref.load %arg1[%c105] : memref<108xf32, #tpu.memory_space<smem>>
    %473 = vector.broadcast %472 : f32 to vector<24x128xf32>
    %474 = arith.mulf %473, %467 : vector<24x128xf32>
    %475 = arith.addf %466, %474 : vector<24x128xf32>
    %c127_i32_67 = arith.constant 127 : i32
    %476 = tpu.dynamic_rotate %467 by %c127_i32_67 dim 1 : vector<24x128xf32>, i32 -> vector<24x128xf32>
    %c52 = arith.constant 52 : index
    %477 = memref.load %arg1[%c52] : memref<108xf32, #tpu.memory_space<smem>>
    %478 = vector.broadcast %477 : f32 to vector<24x128xf32>
    %479 = arith.mulf %478, %476 : vector<24x128xf32>
    %480 = arith.addf %471, %479 : vector<24x128xf32>
    %c106 = arith.constant 106 : index
    %481 = memref.load %arg1[%c106] : memref<108xf32, #tpu.memory_space<smem>>
    %482 = vector.broadcast %481 : f32 to vector<24x128xf32>
    %483 = arith.mulf %482, %476 : vector<24x128xf32>
    %484 = arith.addf %475, %483 : vector<24x128xf32>
    %c126_i32_68 = arith.constant 126 : i32
    %485 = tpu.dynamic_rotate %467 by %c126_i32_68 dim 1 : vector<24x128xf32>, i32 -> vector<24x128xf32>
    %c53 = arith.constant 53 : index
    %486 = memref.load %arg1[%c53] : memref<108xf32, #tpu.memory_space<smem>>
    %487 = vector.broadcast %486 : f32 to vector<24x128xf32>
    %488 = arith.mulf %487, %485 : vector<24x128xf32>
    %489 = arith.addf %480, %488 : vector<24x128xf32>
    %c107 = arith.constant 107 : index
    %490 = memref.load %arg1[%c107] : memref<108xf32, #tpu.memory_space<smem>>
    %491 = vector.broadcast %490 : f32 to vector<24x128xf32>
    %492 = arith.mulf %491, %485 : vector<24x128xf32>
    %493 = arith.addf %484, %492 : vector<24x128xf32>
    %c0_69 = arith.constant 0 : index
    %c0_70 = arith.constant 0 : index
    %c0_71 = arith.constant 0 : index
    %c0_72 = arith.constant 0 : index
    %494 = vector.load %arg3[%c0_69, %c0_70, %c0_71, %c0_72] : memref<1x2x24x128xf32, #tpu.memory_space<vmem>>, vector<1x1x24x128xf32>
    %495 = vector.shape_cast %494 : vector<1x1x24x128xf32> to vector<24x128xf32>
    %496 = vector.shape_cast %489 : vector<24x128xf32> to vector<1x1x24x128xf32>
    tpu.vector_store %arg3[%c0_69, %c0_70, %c0_71, %c0_72], %496 {strides = array<i32>} : memref<1x2x24x128xf32, #tpu.memory_space<vmem>>, vector<1x1x24x128xf32>,
    %c0_73 = arith.constant 0 : index
    %c1_74 = arith.constant 1 : index
    %c0_75 = arith.constant 0 : index
    %c0_76 = arith.constant 0 : index
    %497 = vector.load %arg3[%c0_73, %c1_74, %c0_75, %c0_76] : memref<1x2x24x128xf32, #tpu.memory_space<vmem>>, vector<1x1x24x128xf32>
    %498 = vector.shape_cast %497 : vector<1x1x24x128xf32> to vector<24x128xf32>
    %499 = vector.shape_cast %493 : vector<24x128xf32> to vector<1x1x24x128xf32>
    tpu.vector_store %arg3[%c0_73, %c1_74, %c0_75, %c0_76], %499 {strides = array<i32>} : memref<1x2x24x128xf32, #tpu.memory_space<vmem>>, vector<1x1x24x128xf32>,
    return
  }
  func.func @transform_0(%arg0: i32) -> i32 {
    %c0_i32 = arith.constant 0 : i32
    %c0_i32_0 = arith.constant 0 : i32
    return %c0_i32 : i32
  }
  func.func @transform_1(%arg0: i32) -> (i32, i32, i32, i32) {
    %c0_i32 = arith.constant 0 : i32
    %c0_i32_0 = arith.constant 0 : i32
    %c0_i32_1 = arith.constant 0 : i32
    %c0_i32_2 = arith.constant 0 : i32
    return %arg0, %c0_i32, %c0_i32_0, %c0_i32_1 : i32, i32, i32, i32
  }
  func.func @transform_2(%arg0: i32) -> (i32, i32, i32, i32) {
    %c0_i32 = arith.constant 0 : i32
    %c0_i32_0 = arith.constant 0 : i32
    %c0_i32_1 = arith.constant 0 : i32
    %c0_i32_2 = arith.constant 0 : i32
    return %arg0, %c0_i32, %c0_i32_0, %c0_i32_1 : i32, i32, i32, i32
  }
}

</mosaic_0001>

<bundles_post_ra>
// kernel: tpu_custom_call.1
= control target key start
LH: loop header
LB: loop body
LE: loop exit
PB: predicated region body
PF: predicated region fallthrough
CT: control target
= control target key end

     0   :  { %7 = vsyncpa [#allocation5], 0  ;;  %s3211_s0 = inlined_call_operand.hbm [shape: f32[108], index: 0, kind: input, shape index: {}]   ;;  %s3212_s1 = inlined_call_operand.hbm [shape: f32[8,6,24,128], index: 1, kind: input, shape index: {}]   ;;  %s3213_s2 = inlined_call_operand.hbm [shape: f32[8,2,24,128], index: 2, kind: output, shape index: {}]  }
   0x1   :  { %8 = vsyncpa [#allocation3], 0 }
   0x2   :  { %10 = vsyncpa [#allocation3 + $0x1], 0 }
   0x3   :  { %11 = vsyncpa [#allocation4], 0 }
   0x4   :  { %13 = vsyncpa [#allocation4 + $0x1], 0  ;;  %s1810_s9 = smov 0   ;;  %s1812_s10 = smov 0  }
   0x5   :  { %s1814_s11 = smov 0   ;;  %s1816_s12 = smov 0  }
   0x6 LB: > { %s1831_s13 = sadd.s32 4294967295, %s1784_s12   ;;  %s1459_s14 = sadd.s32 4294967294, %s1784_s12   ;;  %s1784_s12 = sphi %s1816_s12, %s3277_s12   ;;  %s1780_s11 = sphi %s1814_s11, %s3276_s11   ;;  %s1776_s10 = sphi %s1812_s10, %s3275_s10   ;;  %s1772_s9 = sphi %s1810_s9, %s3274_s9  }
   0x7   : > { %s1835_s15 = sadd.s32 1, %s1784_s12   ;;  %s47_s16 = sadd.s32 1, %s1780_s11 }
   0x8   : > { %s44_s17 = ssub.s32 %s1784_s12, %s1835_s15  ;;  %p54_p0 = scmp.ne.s32.totalorder %s1780_s11, %s1776_s10 }
   0x9   : > { %p45_p1 = scmp.eq.s32.totalorder %s44_s17, 0  ;;  %p55_p2 = scmp.eq.s32.totalorder %s1784_s12, 0 }
   0xa   : > { %p60_p3 = scmp.ne.s32.totalorder %s1776_s10, %s1772_s9  ;;  %p3215_p4 = scmp.eq.s32.totalorder %s1831_s13, 0 }
   0xb   : > { %s1847_s18 = scalar_select %p45_p1, %s1780_s11, %s47_s16  }
   0xc   : > { %p1849_p5 = por %p55_p2, %p54_p0  ;;  %p1855_p6 = por %p3215_p4, %p60_p3 }
   0xd   : > { %p84_p7 = scmp.eq.s32.totalorder %s1831_s13, 7  ;;  %p90_p8 = scmp.eq.s32.totalorder %s1459_s14, 7 }
   0xe   : > { %s3224_s20 = scalar_select %p1855_p6, 1, 0 }
   0xf   : > { %p1460_p9 = scmp.ge.s32.totalorder %s1784_s12, 1  ;;  %p97_p10 = scmp.lt.s32.totalorder %s1784_s12, 9 }
  0x10   : > { %p1862_p11 = por %p84_p7, %p54_p0  ;;  %p1866_p12 = por %p90_p8, %p60_p3 }
  0x11   : > { %p1870_p13 = pnand %p1460_p9, %p97_p10  ;;  %p1620_p2 = scmp.lt.s32.totalorder %s1784_s12, 8 }
  0x12   : > { %s3225_s21 = scalar_select %p1862_p11, 1, 0 }
  0x13   : > { %s3226_s22 = scalar_select %p1866_p12, 1, 0 }
  0x14   : > { %p1607_p1 = pneg %p1870_p13  ;;  %s119_s24 = sand.u32 1, %s1780_s11  }
  0x15   : > { %s1595_s25 = smul.u32 2304, %s1784_s12  ;;  %p1883_p0 = pnand %p1620_p2, %p1849_p5 }
  0x16   : > { %p1608_p6 = pnand %p1607_p1, %p3215_p4  ;;  %s1594_s27 = smul.u32 144, %s119_s24 }
  0x17   : > { %s1671_s30 = scalar_lea.hbm %s3211_s0, 16 }
  0x18   : > { %p1672_p3 = scmp.ne.s32.totalorder %s3211_s0, %s1671_s30  ;;  %p1673_p7 = pneg %p1608_p6 }
  0x19   : > { %p1678_p10 = scmp.lt.u32.totalorder %s1671_s30, %s3211_s0 }
  0x1a   : > { %p1674_p8 = pnand %p1673_p7, %p1672_p3 }
  0x1c   : > { %p1675_p9 = pneg %p1674_p8 }
  0x1e   : > { %p1680_p5 = pnand %p1678_p10, %p1675_p9 }
  0x20   : > { %1683 = shalt.err (!%p1680_p5)
}
  0x21   : > { %s1786_s7 = smov [#allocation2]   ;;  %s1902_s19 = scalar_lea.hbm %s3212_s1, %s1595_s25 }
  0x22   : > { %1610 = dma.hbm_to_smem (!%p1608_p6), %s3211_s0, 16, %s1786_s7, [#allocation5]  }
  0x23   : > { %s123_s28 = scalar_lea.vmem [#allocation6], %s1594_s27  ;;  %s1906_s30 = scalar_lea.sflag [#allocation3], %s119_s24 }
  0x24   : > { %s130_s29 = sshll.u32 %s123_s28, 4  ;;  %s1684_s3 = scalar_lea.hbm %s1902_s19, 2304  ;;  %s1904_s29 = int_to_ptr.vmem [resolvable:$true] %s130_s29 }
  0x25   : > { %p1685_p1 = scmp.ne.s32.totalorder %s1902_s19, %s1684_s3  ;;  %p1686_p2 = pneg %p1883_p0 }
  0x26   : > { %s1689_s5 = scalar_lea.hbm %s3212_s1, 18432  ;;  %p1690_p7 = scmp.lt.u32.totalorder %s1902_s19, %s3212_s1 }
  0x27   : > { %p1687_p6 = pnand %p1686_p2, %p1685_p1  ;;  %p1691_p8 = scmp.lt.u32.totalorder %s1689_s5, %s1684_s3 }
  0x28   : > { %p1693_p10 = scmp.lt.u32.totalorder %s1684_s3, %s1902_s19 }
  0x29   : > { %p1688_p3 = pneg %p1687_p6  ;;  %p1692_p9 = por %p1691_p8, %p1690_p7 }
  0x2b   : > { %p1694_p5 = por %p1693_p10, %p1692_p9 }
  0x2d   : > { %p1695_p4 = pnand %p1694_p5, %p1688_p3 }
  0x2f   : > { %1698 = shalt.err (!%p1695_p4)
}
  0x30   : > { %s1699_s24 = scalar_lea.vmem %s1904_s29, 2304  ;;  %s1787_s27 = smov [#allocation6]  }
  0x31   : > { %p1700_p1 = scmp.ne.s32.totalorder %s1904_s29, %s1699_s24  ;;  %s1704_s8 = sshll.u32 %s1787_s27, 4  ;;  %s1705_s8 = int_to_ptr.vmem [resolvable:$false] %s1704_s8 }
  0x32   : > { %s1706_s14 = scalar_lea.vmem %s1705_s8, 4608  ;;  %p1707_p11 = scmp.lt.s32.totalorder %s1904_s29, %s1705_s8 }
  0x33   : > { %p1702_p6 = pnand %p1700_p1, %p1686_p2  ;;  %p1708_p7 = scmp.lt.s32.totalorder %s1706_s14, %s1699_s24 }
  0x35   : > { %p1703_p12 = pneg %p1702_p6  ;;  %p1709_p8 = por %p1708_p7, %p1707_p11 }
  0x37   : > { %p1710_p9 = pnand %p1709_p8, %p1703_p12 }
  0x39   : > { %1713 = shalt.err (!%p1710_p9)
}
  0x3a   : > { %s1788_s16 = smov 128   ;;  %s1789_s17 = smov 8  }
  0x3b   : > { %1614 = dma.hbm_to_vmem [thread:$0]  (!%p1883_p0), %s1902_s19, 2304, %s1904_s29, %s1906_s30, %s1788_s16, %s1788_s16, %s1789_s17  }
  0x3c   : > { %142 = sbr.rel (%p1870_p13) target bundleno = 425 (0x1a9), region = 28 }
  0x43   : > { %p3229_p4 = scmp.eq.s32.totalorder %s1831_s13, 0 }
  0x45   : > { %1759 = dma.done.wait (%p3229_p4), [#allocation5], 16   ;;  %p3230_p2 = pmov %p3229_p4 }
  0x46   : > { %s1941_s28 = sand.u32 1, %s1776_s10   ;;  %p3231_p11 = scmp.ne.s32.totalorder %s3224_s20, 0 }
  0x47   : > { %1761 = vsyncadd (%p3230_p2), [#allocation5], 4294967280  ;;  %s1596_s3 = smul.u32 144, %s1941_s28  ;;  %s149_s25 = scalar_lea.sflag [#allocation3], %s1941_s28 }
  0x49   : > { %s1945_s4 = scalar_lea.vmem [#allocation6], %s1596_s3 }
  0x4a   : > { %1763 = dma.done.wait (%p3231_p11), %s149_s25, 2304  }
  0x4b   : > { %1765 = vsyncadd (%p3231_p11), %s149_s25, 4294964992 }
  0x4c   : > { %157 = sfence }
  0x4d   : > { %v1952_v0 = vld [vmem:[%s1945_s4 + $0x10] sm:$0xff]  ;;  %v1955_v1 = vld [vmem:[%s1945_s4] sm:$0xff]  ;;  %v240_v2 = vlaneseq  ;;  %s1790_s23 = smov 127   ;;  %v1962_v3 = vld [vmem:[%s1945_s4 + $0x8] sm:$0xff]  ;;  %s1791_s20 = smov 126  }
  0x4e   : > { %197 = vrot.lane.b32.xlu1 %v1952_v0, %s1790_s23  ;;  %193 = vrot.lane.b32.xlu0 %v1955_v1, %s1790_s23  ;;  %v238_v5 = vrot.slane %v1962_v3, 1  ;;  %v239_v6 = vrot.slane %v1952_v0, 1  ;;  %v237_v7 = vrot.slane %v1955_v1, 1  ;;  %v307_v11 = vrot.slane %v1962_v3, 2  ;;  %v2031_v17 = vld [vmem:[%s1945_s4 + $0x20] sm:$0xff]  ;;  %v2034_v18 = vld [vmem:[%s1945_s4 + $0x18] sm:$0xff] }
  0x4f   : > { %v1964_v4 = vshrl.u32 %v240_v2, 7  ;;  %v308_v12 = vrot.slane %v1952_v0, 2  ;;  %v306_v13 = vrot.slane %v1955_v1, 2  ;;  %v2041_v19 = vld [vmem:[%s1945_s4 + $0x28] sm:$0xff]  ;;  %v438_v20 = vrot.slane %v2031_v17, 1  ;;  %v2106_v32 = vld [vmem:[%s1945_s4 + $0x38] sm:$0xff] }
  0x50   : > { %v439_v21 = vrot.slane %v2041_v19, 1  ;;  %v437_v22 = vrot.slane %v2034_v18, 1  ;;  %v504_v26 = vrot.slane %v2031_v17, 2  ;;  %v505_v27 = vrot.slane %v2041_v19, 2  ;;  %v2109_v33 = vld [vmem:[%s1945_s4 + $0x30] sm:$0xff]  ;;  %v2116_v34 = vld [vmem:[%s1945_s4 + $0x40] sm:$0xff] }
  0x51   : > { %vm242_vm0 = vcmp.lt.s32.totalorder %v1964_v4, 7  ;;  %vm309_vm1 = vcmp.lt.s32.totalorder %v1964_v4, 6  ;;  %v503_v28 = vrot.slane %v2034_v18, 2  ;;  %v634_v35 = vrot.slane %v2106_v32, 1  ;;  %s1471_s26 = sld [smem:[#allocation2 + $0x3]]  ;;  %s177_s19 = sld [smem:[#allocation2]] }
  0x52   : > { %215 = vrot.lane.b32.xlu1 %v1955_v1, %s1791_s20  ;;  %195 = vrot.lane.b32.xlu0 %v1962_v3, %s1790_s23  ;;  %v1980_v8 = vsel %vm242_vm0, %v238_v5, %v239_v6  ;;  %v1984_v9 = vsel %vm242_vm0, %v237_v7, %v238_v5  ;;  %v1992_v10 = vsel %vm242_vm0, %v239_v6, %v237_v7  ;;  %v635_v36 = vrot.slane %v2116_v34, 1  ;;  %s1466_s29 = sld [smem:[#allocation2 + $0x36]]  ;;  %s1467_s30 = sld [smem:[#allocation2 + $0x1]]  ;;  %v2181_v47 = vld [vmem:[%s1945_s4 + $0x50] sm:$0xff]  ;;  %v2184_v48 = vld [vmem:[%s1945_s4 + $0x48] sm:$0xff] }
  0x53   : > { %v2008_v14 = vsel %vm309_vm1, %v307_v11, %v308_v12  ;;  %v2012_v15 = vsel %vm309_vm1, %v306_v13, %v307_v11  ;;  %v2020_v16 = vsel %vm309_vm1, %v308_v12, %v306_v13  ;;  %v2056_v23 = vsel %vm242_vm0, %v438_v20, %v439_v21  ;;  %s1468_s5 = sld [smem:[#allocation2 + $0x37]]  ;;  %s1472_s6 = sld [smem:[#allocation2 + $0x39]]  ;;  %v2191_v49 = vld [vmem:[%s1945_s4 + $0x58] sm:$0xff] }
  0x54   : > { %v2060_v24 = vsel %vm242_vm0, %v437_v22, %v438_v20  ;;  %v2068_v25 = vsel %vm242_vm0, %v439_v21, %v437_v22  ;;  %v2083_v29 = vsel %vm309_vm1, %v504_v26, %v505_v27  ;;  %v2087_v30 = vsel %vm309_vm1, %v503_v28, %v504_v26  ;;  %s1469_s7 = sld [smem:[#allocation2 + $0x2]]  ;;  %s1470_s24 = sld [smem:[#allocation2 + $0x38]] }
  0x55   : > { %v2095_v31 = vsel %vm309_vm1, %v505_v27, %v503_v28  ;;  %v633_v37 = vrot.slane %v2109_v33, 1  ;;  %v2131_v38 = vsel %vm242_vm0, %v634_v35, %v635_v36  ;;  %v700_v41 = vrot.slane %v2106_v32, 2  ;;  %s2197_s27 = sld [smem:[#allocation2 + $0x6]]  ;;  %s2209_s8 = sld [smem:[#allocation2 + $0x4]] }
  0x56   : > { %219 = vrot.lane.b32.xlu1 %v1952_v0, %s1791_s20  ;;  %217 = vrot.lane.b32.xlu0 %v1962_v3, %s1791_s20  ;;  %v701_v42 = vrot.slane %v2116_v34, 2  ;;  %v699_v43 = vrot.slane %v2109_v33, 2  ;;  %v830_v56 = vrot.slane %v2181_v47, 1  ;;  %v831_v57 = vrot.slane %v2191_v49, 1  ;;  %s2219_s14 = sld [smem:[#allocation2 + $0x3a]]  ;;  %s2231_s16 = sld [smem:[#allocation2 + $0x3c]] }
  0x57   : > { %v2135_v39 = vsel %vm242_vm0, %v633_v37, %v634_v35  ;;  %v2143_v40 = vsel %vm242_vm0, %v635_v36, %v633_v37  ;;  %v247_v50 = vstv %s1471_s26  ;;  %v178_v51 = vstv %s177_s19  ;;  %s2234_s17 = sld [smem:[#allocation2 + $0x5]]  ;;  %s2236_s3 = sld [smem:[#allocation2 + $0x3b]] }
  0x58   : > { %v2158_v44 = vsel %vm309_vm1, %v700_v41, %v701_v42  ;;  %v2162_v45 = vsel %vm309_vm1, %v699_v43, %v700_v41  ;;  %v2170_v46 = vsel %vm309_vm1, %v701_v42, %v699_v43  ;;  %v186_v52 = vstv %s1466_s29  ;;  %s2257_s25 = sld [smem:[#allocation2 + $0x7]]  ;;  %s2261_s26 = sld [smem:[#allocation2 + $0x3d]] }
  0x59   : > { %3232 = vst [vmem:[#allocation11_spill] sm:$0xff] %v2170_v46  ;;  %v200_v53 = vstv %s1467_s30  ;;  %v208_v54 = vstv %s1468_s5  ;;  %v255_v55 = vstv %s1472_s6  ;;  %v829_v58 = vrot.slane %v2184_v48, 1  ;;  %s2277_s19 = sld [smem:[#allocation2 + $0x8]]  ;;  %s2279_s29 = sld [smem:[#allocation2 + $0x3e]] }
  0x5a   : > { %264 = vrot.lane.b32.xlu1 %v1980_v8, %s1790_s23  ;;  %262 = vrot.lane.b32.xlu0 %v1984_v9, %s1790_s23  ;;  %v2203_v59 = vmul.f32 %v247_v50, %v1980_v8  ;;  %v2206_v60 = vmul.f32 %v255_v55, %v1980_v8  ;;  %v179_v63 = vmul.f32 %v178_v51, %v1955_v1  ;;  %v230_v13 = vstv %s1470_s24  ;;  %s2286_s30 = sld [smem:[#allocation2 + $0x9]]  ;;  %s2288_s5 = sld [smem:[#allocation2 + $0x3f]] }
  0x5b   : > { %v248_v2 = vmul.f32 %v247_v50, %v1984_v9  ;;  %v187_v5 = vmul.f32 %v186_v52, %v1955_v1  ;;  %v256_v11 = vmul.f32 %v255_v55, %v1984_v9  ;;  %v250_v12 = vmul.f32 %v247_v50, %v1992_v10  ;;  %s2303_s6 = sld [smem:[#allocation2 + $0xc]]  ;;  %s2315_s24 = sld [smem:[#allocation2 + $0x40]] }
  0x5c   : > { %v181_v20 = vmul.f32 %v178_v51, %v1952_v0  ;;  %v189_v1 = vmul.f32 %v186_v52, %v1952_v0  ;;  %v2225_v21 = vsel %vm242_vm0, %v830_v56, %v831_v57  ;;  %v180_v35 = vmul.f32 %v178_v51, %v1962_v3  ;;  %p3272_p13 = scmp.ne.s32.totalorder %s3225_s21, 0 }
  0x5d   : > { %v258_v43 = vmul.f32 %v255_v55, %v1992_v10  ;;  %v188_v50 = vmul.f32 %v186_v52, %v1962_v3  ;;  %v314_v51 = vstv %s2197_s27  ;;  %v269_v52 = vstv %s2209_s8  ;;  %s2329_s27 = sld [smem:[#allocation2 + $0xb]]  ;;  %s2331_s8 = sld [smem:[#allocation2 + $0x41]] }
  0x5e   : > { %284 = vrot.lane.b32.xlu1 %v1984_v9, %s1791_s20  ;;  %266 = vrot.lane.b32.xlu0 %v1992_v10, %s1790_s23  ;;  %v2229_v9 = vsel %vm242_vm0, %v829_v58, %v830_v56 }
  0x62   : > { %288 = vrot.lane.b32.xlu1 %v1992_v10, %s1791_s20  ;;  %286 = vrot.lane.b32.xlu0 %v1980_v8, %s1791_s20  ;;  %v222_v8 = vstv %s1469_s7  ;;  %s2307_s7 = sld [smem:[#allocation2 + $0xa]] }
  0x66   : > { %331 = vrot.lane.b32.xlu1 %v2008_v14, %s1790_s23  ;;  %329 = vrot.lane.b32.xlu0 %v2012_v15, %s1790_s23 }
  0x6a   : > { %351 = vrot.lane.b32.xlu1 %v2012_v15, %s1791_s20  ;;  %333 = vrot.lane.b32.xlu0 %v2020_v16, %s1790_s23 }
  0x6e   : > { %355 = vrot.lane.b32.xlu1 %v2020_v16, %s1791_s20  ;;  %353 = vrot.lane.b32.xlu0 %v2008_v14, %s1791_s20 }
  0x72   : > { %395 = vrot.lane.b32.xlu1 %v2031_v17, %s1790_s23  ;;  %393 = vrot.lane.b32.xlu0 %v2034_v18, %s1790_s23 }
  0x76   : > { %415 = vrot.lane.b32.xlu1 %v2034_v18, %s1791_s20  ;;  %397 = vrot.lane.b32.xlu0 %v2041_v19, %s1790_s23 }
  0x7a   : > { %419 = vrot.lane.b32.xlu1 %v2041_v19, %s1791_s20  ;;  %417 = vrot.lane.b32.xlu0 %v2031_v17, %s1791_s20 }
  0x7e   : > { %461 = vrot.lane.b32.xlu1 %v2056_v23, %s1790_s23  ;;  %459 = vrot.lane.b32.xlu0 %v2060_v24, %s1790_s23 }
  0x82   : > { %481 = vrot.lane.b32.xlu1 %v2060_v24, %s1791_s20  ;;  %463 = vrot.lane.b32.xlu0 %v2068_v25, %s1790_s23 }
  0x86   : > { %485 = vrot.lane.b32.xlu1 %v2068_v25, %s1791_s20  ;;  %483 = vrot.lane.b32.xlu0 %v2056_v23, %s1791_s20 }
  0x8a   : > { %527 = vrot.lane.b32.xlu1 %v2083_v29, %s1790_s23  ;;  %525 = vrot.lane.b32.xlu0 %v2087_v30, %s1790_s23 }
  0x8e   : > { %547 = vrot.lane.b32.xlu1 %v2087_v30, %s1791_s20  ;;  %529 = vrot.lane.b32.xlu0 %v2095_v31, %s1790_s23 }
  0x92   : > { %551 = vrot.lane.b32.xlu1 %v2095_v31, %s1791_s20  ;;  %549 = vrot.lane.b32.xlu0 %v2083_v29, %s1791_s20 }
  0x96   : > { %591 = vrot.lane.b32.xlu1 %v2106_v32, %s1790_s23  ;;  %589 = vrot.lane.b32.xlu0 %v2109_v33, %s1790_s23 }
  0x9a   : > { %611 = vrot.lane.b32.xlu1 %v2109_v33, %s1791_s20  ;;  %593 = vrot.lane.b32.xlu0 %v2116_v34, %s1790_s23 }
  0x9e   : > { %615 = vrot.lane.b32.xlu1 %v2116_v34, %s1791_s20  ;;  %613 = vrot.lane.b32.xlu0 %v2106_v32, %s1791_s20 }
  0xa2   : > { %657 = vrot.lane.b32.xlu1 %v2131_v38, %s1790_s23  ;;  %655 = vrot.lane.b32.xlu0 %v2135_v39, %s1790_s23 }
  0xa6   : > { %677 = vrot.lane.b32.xlu1 %v2135_v39, %s1791_s20  ;;  %659 = vrot.lane.b32.xlu0 %v2143_v40, %s1790_s23 }
  0xaa   : > { %681 = vrot.lane.b32.xlu1 %v2143_v40, %s1791_s20  ;;  %679 = vrot.lane.b32.xlu0 %v2131_v38, %s1791_s20 }
  0xae   : > { %723 = vrot.lane.b32.xlu1 %v2158_v44, %s1790_s23  ;;  %721 = vrot.lane.b32.xlu0 %v2162_v45, %s1790_s23 }
  0xb2   : > { %743 = vrot.lane.b32.xlu1 %v2162_v45, %s1791_s20  ;;  %725 = vrot.lane.b32.xlu0 %v2170_v46, %s1790_s23 }
  0xb6   : > { %747 = vrot.lane.b32.xlu1 %v2170_v46, %s1791_s20  ;;  %745 = vrot.lane.b32.xlu0 %v2158_v44, %s1791_s20 }
  0xba   : > { %787 = vrot.lane.b32.xlu1 %v2181_v47, %s1790_s23  ;;  %785 = vrot.lane.b32.xlu0 %v2184_v48, %s1790_s23 }
  0xbe   : > { %807 = vrot.lane.b32.xlu1 %v2184_v48, %s1791_s20  ;;  %789 = vrot.lane.b32.xlu0 %v2191_v49, %s1790_s23 }
  0xc0   : > { %v198_v61 = vpop.permute.xlu1 %197  ;;  %v194_v62 = vpop.permute.xlu0 %193 }
  0xc1   : > { %v201_v6 = vmul.f32 %v200_v53, %v194_v62  ;;  %v209_v7 = vmul.f32 %v208_v54, %v194_v62  ;;  %v203_v22 = vmul.f32 %v200_v53, %v198_v61  ;;  %v211_v26 = vmul.f32 %v208_v54, %v198_v61 }
  0xc2   : > { %811 = vrot.lane.b32.xlu1 %v2191_v49, %s1791_s20  ;;  %809 = vrot.lane.b32.xlu0 %v2181_v47, %s1791_s20 }
  0xc3   : > { %v204_v27 = vadd.f32 %v201_v6, %v179_v63  ;;  %v212_v37 = vadd.f32 %v209_v7, %v187_v5  ;;  %v206_v63 = vadd.f32 %v203_v22, %v181_v20  ;;  %v214_v5 = vadd.f32 %v211_v26, %v189_v1 }
  0xc4   : > { %v216_v28 = vpop.permute.xlu1 %215  ;;  %v196_v36 = vpop.permute.xlu0 %195  ;;  %v896_v1 = vrot.slane %v2181_v47, 2 }
  0xc5   : > { %v223_v0 = vmul.f32 %v222_v8, %v216_v28  ;;  %v231_v41 = vmul.f32 %v230_v13, %v216_v28  ;;  %v202_v42 = vmul.f32 %v200_v53, %v196_v36  ;;  %v210_v56 = vmul.f32 %v208_v54, %v196_v36 }
  0xc6   : > { %853 = vrot.lane.b32.xlu1 %v2225_v21, %s1790_s23  ;;  %851 = vrot.lane.b32.xlu0 %v2229_v9, %s1790_s23  ;;  %v2247_v53 = vsel %vm242_vm0, %v831_v57, %v829_v58  ;;  %v277_v57 = vstv %s2219_s14  ;;  %s2339_s14 = sld [smem:[#allocation2 + $0x42]] }
  0xc7   : > { %v226_v61 = vadd.f32 %v223_v0, %v204_v27  ;;  %v234_v62 = vadd.f32 %v231_v41, %v212_v37  ;;  %v205_v10 = vadd.f32 %v202_v42, %v180_v35  ;;  %v213_v36 = vadd.f32 %v210_v56, %v188_v50 }
  0xc8   : > { %v220_v55 = vpop.permute.xlu1 %219  ;;  %v218_v3 = vpop.permute.xlu0 %217  ;;  %v895_v35 = vrot.slane %v2184_v48, 2  ;;  %v291_v41 = vstv %s2234_s17  ;;  %v299_v42 = vstv %s2236_s3  ;;  %s2362_s17 = sld [smem:[#allocation2 + $0x43]]  ;;  %s2369_s3 = sld [smem:[#allocation2 + $0xf]] }
  0xc9   : > { %v251_v54 = vadd.f32 %v248_v2, %v226_v61  ;;  %v259_v6 = vadd.f32 %v256_v11, %v234_v62  ;;  %v225_v7 = vmul.f32 %v222_v8, %v220_v55  ;;  %v233_v28 = vmul.f32 %v230_v13, %v220_v55 }
  0xca   : > { %v224_v46 = vmul.f32 %v222_v8, %v218_v3  ;;  %v232_v27 = vmul.f32 %v230_v13, %v218_v3  ;;  %873 = vrot.lane.b32.xlu1 %v2229_v9, %s1791_s20  ;;  %855 = vrot.lane.b32.xlu0 %v2247_v53, %s1790_s23  ;;  %v897_v2 = vrot.slane %v2191_v49, 2  ;;  %v322_v11 = vstv %s2231_s16  ;;  %s2360_s16 = sld [smem:[#allocation2 + $0xd]] }
  0xcb   : > { %v228_v58 = vadd.f32 %v225_v7, %v206_v63  ;;  %v236_v20 = vadd.f32 %v233_v28, %v214_v5  ;;  %v315_v61 = vmul.f32 %v314_v51, %v2012_v15  ;;  %v2284_v63 = vsel %vm309_vm1, %v895_v35, %v896_v1 }
  0xcc   : > { %v227_v8 = vadd.f32 %v224_v46, %v205_v10  ;;  %v235_v13 = vadd.f32 %v232_v27, %v213_v36  ;;  %v265_v22 = vpop.permute.xlu1 %264  ;;  %v263_v26 = vpop.permute.xlu0 %262  ;;  %v316_v46 = vmul.f32 %v314_v51, %v2008_v14  ;;  %v2275_v48 = vsel %vm309_vm1, %v896_v1, %v897_v2 }
  0xcd   : > { %v253_v37 = vadd.f32 %v250_v12, %v228_v58  ;;  %v261_v0 = vadd.f32 %v258_v43, %v236_v20  ;;  %v270_v49 = vmul.f32 %v269_v52, %v263_v26  ;;  %v278_v56 = vmul.f32 %v277_v57, %v263_v26 }
  0xce   : > { %v252_v50 = vadd.f32 %v2203_v59, %v227_v8  ;;  %v260_v47 = vadd.f32 %v2206_v60, %v235_v13  ;;  %877 = vrot.lane.b32.xlu1 %v2247_v53, %s1791_s20  ;;  %875 = vrot.lane.b32.xlu0 %v2225_v21, %s1791_s20  ;;  %v323_v59 = vmul.f32 %v322_v11, %v2012_v15  ;;  %v336_v58 = vstv %s2257_s25  ;;  %s2381_s25 = sld [smem:[#allocation2 + $0xe]] }
  0xcf   : > { %v273_v60 = vadd.f32 %v270_v49, %v251_v54  ;;  %v281_v12 = vadd.f32 %v278_v56, %v259_v6  ;;  %v324_v15 = vmul.f32 %v322_v11, %v2008_v14  ;;  %v317_v54 = vmul.f32 %v314_v51, %v2020_v16 }
  0xd0   : > { %v285_v43 = vpop.permute.xlu1 %284  ;;  %v267_v62 = vpop.permute.xlu0 %266  ;;  %v271_v6 = vmul.f32 %v269_v52, %v265_v22  ;;  %v279_v7 = vmul.f32 %v277_v57, %v265_v22  ;;  %v325_v28 = vmul.f32 %v322_v11, %v2020_v16  ;;  %v2300_v14 = vsel %vm309_vm1, %v897_v2, %v895_v35 }
  0xd1   : > { %v292_v5 = vmul.f32 %v291_v41, %v285_v43  ;;  %v300_v10 = vmul.f32 %v299_v42, %v285_v43  ;;  %v272_v55 = vmul.f32 %v269_v52, %v267_v62  ;;  %v280_v3 = vmul.f32 %v277_v57, %v267_v62 }
  0xd2   : > { %919 = vrot.lane.b32.xlu1 %v2275_v48, %s1790_s23  ;;  %917 = vrot.lane.b32.xlu0 %v2284_v63, %s1790_s23  ;;  %v344_v51 = vstv %s2261_s26  ;;  %v274_v22 = vadd.f32 %v271_v6, %v252_v50  ;;  %v282_v26 = vadd.f32 %v279_v7, %v260_v47  ;;  %v358_v49 = vstv %s2277_s19  ;;  %s2383_s26 = sld [smem:[#allocation2 + $0x44]]  ;;  %s2393_s19 = sld [smem:[#allocation2 + $0x45]] }
  0xd3   : > { %v295_v36 = vadd.f32 %v292_v5, %v273_v60  ;;  %v303_v27 = vadd.f32 %v300_v10, %v281_v12  ;;  %v275_v20 = vadd.f32 %v272_v55, %v253_v37  ;;  %v283_v1 = vadd.f32 %v280_v3, %v261_v0 }
  0xd4   : > { %v289_v8 = vpop.permute.xlu1 %288  ;;  %v287_v13 = vpop.permute.xlu0 %286  ;;  %v366_v56 = vstv %s2279_s29  ;;  %v378_v47 = vstv %s2286_s30  ;;  %s2416_s29 = sld [smem:[#allocation2 + $0x10]]  ;;  %s2418_s30 = sld [smem:[#allocation2 + $0x46]] }
  0xd5   : > { %v318_v52 = vadd.f32 %v315_v61, %v295_v36  ;;  %v326_v57 = vadd.f32 %v323_v59, %v303_v27  ;;  %v294_v16 = vmul.f32 %v291_v41, %v289_v8  ;;  %v302_v11 = vmul.f32 %v299_v42, %v289_v8 }
  0xd6   : > { %v293_v37 = vmul.f32 %v291_v41, %v287_v13  ;;  %v301_v0 = vmul.f32 %v299_v42, %v287_v13  ;;  %939 = vrot.lane.b32.xlu1 %v2284_v63, %s1791_s20  ;;  %921 = vrot.lane.b32.xlu0 %v2300_v14, %s1790_s23  ;;  %v386_v41 = vstv %s2288_s5  ;;  %v379_v6 = vmul.f32 %v2034_v18, %v378_v47  ;;  %s2431_s5 = sld [smem:[#allocation2 + $0x11]] }
  0xd7   : > { %v297_v2 = vadd.f32 %v294_v16, %v275_v20  ;;  %v305_v35 = vadd.f32 %v302_v11, %v283_v1  ;;  %v387_v7 = vmul.f32 %v2034_v18, %v386_v41  ;;  %v2327_v1 = vld [vmem:[%s1945_s4 + $0x60] sm:$0xff]  ;;  %v2334_v11 = vstv %s2303_s6  ;;  %s2433_s6 = sld [smem:[#allocation2 + $0x47]] }
  0xd8   : > { %v296_v61 = vadd.f32 %v293_v37, %v274_v22  ;;  %v304_v59 = vadd.f32 %v301_v0, %v282_v26  ;;  %v332_v60 = vpop.permute.xlu1 %331  ;;  %v330_v50 = vpop.permute.xlu0 %329 }
  0xd9   : > { %v320_v42 = vadd.f32 %v317_v54, %v297_v2  ;;  %v328_v12 = vadd.f32 %v325_v28, %v305_v35  ;;  %v338_v43 = vmul.f32 %v336_v58, %v332_v60  ;;  %v346_v62 = vmul.f32 %v344_v51, %v332_v60  ;;  %v2324_v54 = vld [vmem:[%s1945_s4 + $0x68] sm:$0xff] }
  0xda   : > { %v319_v5 = vadd.f32 %v316_v46, %v296_v61  ;;  %v327_v10 = vadd.f32 %v324_v15, %v304_v59  ;;  %v337_v55 = vmul.f32 %v336_v58, %v330_v50  ;;  %v345_v3 = vmul.f32 %v344_v51, %v330_v50  ;;  %943 = vrot.lane.b32.xlu1 %v2300_v14, %s1791_s20  ;;  %v2347_v61 = vld [vmem:[%s1945_s4 + $0x70] sm:$0xff] }
  0xdb   : > { %941 = vrot.lane.b32.xlu0 %v2275_v48, %s1791_s20  ;;  %v380_v2 = vmul.f32 %v2031_v17, %v378_v47  ;;  %v408_v59 = vstv %s2315_s24  ;;  %s2444_s24 = sld [smem:[#allocation2 + $0x48]] }
  0xdc   : > { %v341_v28 = vadd.f32 %v338_v43, %v319_v5  ;;  %v349_v36 = vadd.f32 %v346_v62, %v327_v10  ;;  %v340_v46 = vadd.f32 %v337_v55, %v318_v52  ;;  %v348_v15 = vadd.f32 %v345_v3, %v326_v57  ;;  %v352_v27 = vpop.permute.xlu1 %351  ;;  %v334_v20 = vpop.permute.xlu0 %333 }
  0xdd   : > { %v359_v8 = vmul.f32 %v358_v49, %v352_v27  ;;  %v367_v13 = vmul.f32 %v366_v56, %v352_v27  ;;  %v339_v16 = vmul.f32 %v336_v58, %v334_v20  ;;  %v347_v18 = vmul.f32 %v344_v51, %v334_v20 }
  0xde   : > { %983 = vrot.lane.b32.xlu1 %v2324_v54, %s1790_s23  ;;  %v400_v52 = vstv %s2307_s7  ;;  %v381_v58 = vmul.f32 %v2041_v19, %v378_v47  ;;  %v389_v51 = vmul.f32 %v2041_v19, %v386_v41  ;;  %v1026_v19 = vrot.slane %v2324_v54, 1  ;;  %s2442_s7 = sld [smem:[#allocation2 + $0x12]] }
  0xdf   : > { %v362_v57 = vadd.f32 %v359_v8, %v340_v46  ;;  %v370_v22 = vadd.f32 %v367_v13, %v348_v15  ;;  %v342_v26 = vadd.f32 %v339_v16, %v320_v42  ;;  %v350_v37 = vadd.f32 %v347_v18, %v328_v12  ;;  %981 = vrot.lane.b32.xlu0 %v2327_v1, %s1790_s23 }
  0xe0   : > { %v356_v0 = vpop.permute.xlu1 %355  ;;  %v354_v35 = vpop.permute.xlu0 %353  ;;  %v388_v12 = vmul.f32 %v2031_v17, %v386_v41  ;;  %v1027_v55 = vrot.slane %v2347_v61, 1  ;;  %v1025_v3 = vrot.slane %v2327_v1, 1 }
  0xe1   : > { %v382_v60 = vadd.f32 %v379_v6, %v362_v57  ;;  %v390_v50 = vadd.f32 %v387_v7, %v370_v22  ;;  %v361_v43 = vmul.f32 %v358_v49, %v356_v0  ;;  %v369_v42 = vmul.f32 %v366_v56, %v356_v0 }
  0xe2   : > { %v360_v62 = vmul.f32 %v358_v49, %v354_v35  ;;  %v368_v5 = vmul.f32 %v366_v56, %v354_v35  ;;  %1003 = vrot.lane.b32.xlu1 %v2327_v1, %s1791_s20  ;;  %v422_v49 = vstv %s2329_s27  ;;  %v430_v56 = vstv %s2331_s8  ;;  %s2461_s27 = sld [smem:[#allocation2 + $0x13]]  ;;  %s2463_s8 = sld [smem:[#allocation2 + $0x49]] }
  0xe3   : > { %v364_v47 = vadd.f32 %v361_v43, %v342_v26  ;;  %v372_v10 = vadd.f32 %v369_v42, %v350_v37  ;;  %985 = vrot.lane.b32.xlu0 %v2347_v61, %s1790_s23  ;;  %v2375_v57 = vsel %vm242_vm0, %v1026_v19, %v1027_v55  ;;  %v2379_v22 = vsel %vm242_vm0, %v1025_v3, %v1026_v19 }
  0xe4   : > { %v363_v6 = vadd.f32 %v360_v62, %v341_v28  ;;  %v371_v7 = vadd.f32 %v368_v5, %v349_v36  ;;  %v396_v46 = vpop.permute.xlu1 %395  ;;  %v394_v17 = vpop.permute.xlu0 %393  ;;  %v446_v28 = vmul.f32 %v2334_v11, %v2056_v23  ;;  %v452_v36 = vstv %s2339_s14  ;;  %s2482_s14 = sld [smem:[#allocation2 + $0x14]] }
  0xe5   : > { %v384_v41 = vadd.f32 %v381_v58, %v364_v47  ;;  %v392_v15 = vadd.f32 %v389_v51, %v372_v10  ;;  %v402_v27 = vmul.f32 %v400_v52, %v396_v46  ;;  %v410_v20 = vmul.f32 %v408_v59, %v396_v46 }
  0xe6   : > { %v383_v8 = vadd.f32 %v380_v2, %v363_v6  ;;  %v391_v13 = vadd.f32 %v388_v12, %v371_v7  ;;  %v401_v16 = vmul.f32 %v400_v52, %v394_v17  ;;  %v409_v18 = vmul.f32 %v408_v59, %v394_v17  ;;  %1007 = vrot.lane.b32.xlu1 %v2347_v61, %s1791_s20 }
  0xe7   : > { %1005 = vrot.lane.b32.xlu0 %v2324_v54, %s1791_s20  ;;  %v454_v62 = vmul.f32 %v452_v36, %v2056_v23  ;;  %v445_v5 = vmul.f32 %v2334_v11, %v2060_v24  ;;  %v455_v23 = vmul.f32 %v452_v36, %v2068_v25  ;;  %v474_v7 = vstv %s2362_s17  ;;  %s2495_s17 = sld [smem:[#allocation2 + $0x15]] }
  0xe8   : > { %v405_v26 = vadd.f32 %v402_v27, %v383_v8  ;;  %v413_v37 = vadd.f32 %v410_v20, %v391_v13  ;;  %v404_v58 = vadd.f32 %v401_v16, %v382_v60  ;;  %v412_v51 = vadd.f32 %v409_v18, %v390_v50  ;;  %v416_v0 = vpop.permute.xlu1 %415  ;;  %v398_v2 = vpop.permute.xlu0 %397 }
  0xe9   : > { %v423_v35 = vmul.f32 %v422_v49, %v416_v0  ;;  %v431_v43 = vmul.f32 %v430_v56, %v416_v0  ;;  %v403_v42 = vmul.f32 %v400_v52, %v398_v2  ;;  %v411_v12 = vmul.f32 %v408_v59, %v398_v2 }
  0xea   : > { %v453_v60 = vmul.f32 %v452_v36, %v2060_v24  ;;  %v447_v50 = vmul.f32 %v2334_v11, %v2068_v25  ;;  %1049 = vrot.lane.b32.xlu1 %v2375_v57, %s1790_s23  ;;  %v2400_v24 = vsel %vm242_vm0, %v1027_v55, %v1025_v3  ;;  %v466_v11 = vstv %s2360_s16  ;;  %s2484_s16 = sld [smem:[#allocation2 + $0x4a]] }
  0xeb   : > { %v426_v19 = vadd.f32 %v423_v35, %v404_v58  ;;  %v434_v52 = vadd.f32 %v431_v43, %v412_v51  ;;  %v406_v59 = vadd.f32 %v403_v42, %v384_v41  ;;  %v414_v47 = vadd.f32 %v411_v12, %v392_v15  ;;  %1047 = vrot.lane.b32.xlu0 %v2379_v22, %s1790_s23 }
  0xec   : > { %v420_v10 = vpop.permute.xlu1 %419  ;;  %v418_v6 = vpop.permute.xlu0 %417  ;;  %v1092_v20 = vrot.slane %v2324_v54, 2  ;;  %v1093_v8 = vrot.slane %v2347_v61, 2  ;;  %v510_v18 = vstv %s2369_s3  ;;  %v488_v36 = vstv %s2381_s25  ;;  %s2497_s3 = sld [smem:[#allocation2 + $0x4b]]  ;;  %s2511_s25 = sld [smem:[#allocation2 + $0x16]] }
  0xed   : > { %v425_v46 = vmul.f32 %v422_v49, %v420_v10  ;;  %v433_v17 = vmul.f32 %v430_v56, %v420_v10  ;;  %v424_v27 = vmul.f32 %v422_v49, %v418_v6  ;;  %v432_v41 = vmul.f32 %v430_v56, %v418_v6 }
  0xee   : > { %1069 = vrot.lane.b32.xlu1 %v2379_v22, %s1791_s20  ;;  %v448_v15 = vadd.f32 %v445_v5, %v426_v19  ;;  %v456_v25 = vadd.f32 %v453_v60, %v434_v52  ;;  %v496_v58 = vstv %s2383_s26  ;;  %v1091_v51 = vrot.slane %v2327_v1, 2  ;;  %s2513_s26 = sld [smem:[#allocation2 + $0x4c]] }
  0xef   : > { %v428_v55 = vadd.f32 %v425_v46, %v406_v59  ;;  %v436_v3 = vadd.f32 %v433_v17, %v414_v47  ;;  %v427_v13 = vadd.f32 %v424_v27, %v405_v26  ;;  %v435_v16 = vadd.f32 %v432_v41, %v413_v37  ;;  %1051 = vrot.lane.b32.xlu0 %v2400_v24, %s1790_s23 }
  0xf0   : > { %v462_v49 = vpop.permute.xlu1 %461  ;;  %v460_v56 = vpop.permute.xlu0 %459  ;;  %v518_v42 = vstv %s2393_s19  ;;  %v2425_v1 = vsel %vm309_vm1, %v1092_v20, %v1093_v8  ;;  %v512_v10 = vmul.f32 %v510_v18, %v2083_v29  ;;  %v511_v6 = vmul.f32 %v510_v18, %v2087_v30  ;;  %s1519_s19 = sld [smem:[#allocation2 + $0x18]] }
  0xf1   : > { %v449_v0 = vadd.f32 %v446_v28, %v427_v13  ;;  %v457_v2 = vadd.f32 %v454_v62, %v435_v16  ;;  %v468_v54 = vmul.f32 %v466_v11, %v462_v49  ;;  %v476_v35 = vmul.f32 %v474_v7, %v462_v49 }
  0xf2   : > { %v467_v61 = vmul.f32 %v466_v11, %v460_v56  ;;  %v475_v43 = vmul.f32 %v474_v7, %v460_v56  ;;  %1073 = vrot.lane.b32.xlu1 %v2400_v24, %s1791_s20  ;;  %v450_v26 = vadd.f32 %v447_v50, %v428_v55  ;;  %v458_v37 = vadd.f32 %v455_v23, %v436_v3 }
  0xf3   : > { %v471_v12 = vadd.f32 %v468_v54, %v449_v0  ;;  %v479_v5 = vadd.f32 %v476_v35, %v457_v2  ;;  %1071 = vrot.lane.b32.xlu0 %v2375_v57, %s1791_s20  ;;  %v2429_v50 = vsel %vm309_vm1, %v1091_v51, %v1092_v20  ;;  %v519_v46 = vmul.f32 %v518_v42, %v2087_v30 }
  0xf4   : > { %v470_v28 = vadd.f32 %v467_v61, %v448_v15  ;;  %v478_v62 = vadd.f32 %v475_v43, %v456_v25  ;;  %v482_v60 = vpop.permute.xlu1 %481  ;;  %v464_v19 = vpop.permute.xlu0 %463  ;;  %v513_v30 = vmul.f32 %v510_v18, %v2095_v31  ;;  %v2451_v55 = vsel %vm309_vm1, %v1093_v8, %v1091_v51 }
  0xf5   : > { %v489_v52 = vmul.f32 %v488_v36, %v482_v60  ;;  %v497_v59 = vmul.f32 %v496_v58, %v482_v60  ;;  %v469_v47 = vmul.f32 %v466_v11, %v464_v19  ;;  %v477_v23 = vmul.f32 %v474_v7, %v464_v19  ;;  %v2470_v19 = vld [vmem:[%s1945_s4 + $0x80] sm:$0xff] }
  0xf6   : > { %1115 = vrot.lane.b32.xlu1 %v2425_v1, %s1790_s23  ;;  %v520_v11 = vmul.f32 %v518_v42, %v2083_v29  ;;  %v521_v7 = vmul.f32 %v518_v42, %v2095_v31  ;;  %v532_v29 = vstv %s2416_s29  ;;  %v540_v56 = vstv %s2418_s30  ;;  %s1520_s29 = sld [smem:[#allocation2 + $0x4e]] }
  0xf7   : > { %v492_v17 = vadd.f32 %v489_v52, %v470_v28  ;;  %v500_v27 = vadd.f32 %v497_v59, %v478_v62  ;;  %v472_v41 = vadd.f32 %v469_v47, %v450_v26  ;;  %v480_v15 = vadd.f32 %v477_v23, %v458_v37  ;;  %1113 = vrot.lane.b32.xlu0 %v2429_v50, %s1790_s23  ;;  %s1534_s30 = sld [smem:[#allocation2 + $0x1e]] }
  0xf8   : > { %v486_v25 = vpop.permute.xlu1 %485  ;;  %v484_v20 = vpop.permute.xlu0 %483  ;;  %v554_v61 = vstv %s2431_s5  ;;  %v574_v52 = vstv %s2442_s7  ;;  %v582_v59 = vstv %s2444_s24  ;;  %s1535_s5 = sld [smem:[#allocation2 + $0x54]]  ;;  %s1541_s7 = sld [smem:[#allocation2 + $0x57]] }
  0xf9   : > { %v491_v3 = vmul.f32 %v488_v36, %v486_v25  ;;  %v499_v13 = vmul.f32 %v496_v58, %v486_v25  ;;  %v490_v16 = vmul.f32 %v488_v36, %v484_v20  ;;  %v498_v49 = vmul.f32 %v496_v58, %v484_v20  ;;  %s2610_s24 = sld [smem:[#allocation2 + $0x27]] }
  0xfa   : > { %1135 = vrot.lane.b32.xlu1 %v2429_v50, %s1791_s20  ;;  %v514_v18 = vadd.f32 %v511_v6, %v492_v17  ;;  %v522_v0 = vadd.f32 %v519_v46, %v500_v27  ;;  %v562_v36 = vstv %s2433_s6  ;;  %v2475_v46 = vld [vmem:[%s1945_s4 + $0x78] sm:$0xff]  ;;  %s1540_s6 = sld [smem:[#allocation2 + $0x21]] }
  0xfb   : > { %v494_v31 = vadd.f32 %v491_v3, %v472_v41  ;;  %v502_v2 = vadd.f32 %v499_v13, %v480_v15  ;;  %v493_v54 = vadd.f32 %v490_v16, %v471_v12  ;;  %v501_v35 = vadd.f32 %v498_v49, %v479_v5  ;;  %1117 = vrot.lane.b32.xlu0 %v2451_v55, %s1790_s23 }
  0xfc   : > { %v528_v8 = vpop.permute.xlu1 %527  ;;  %v526_v51 = vpop.permute.xlu0 %525 }
  0xfd   : > { %v515_v58 = vadd.f32 %v512_v10, %v493_v54  ;;  %v523_v43 = vadd.f32 %v520_v11, %v501_v35  ;;  %v534_v26 = vmul.f32 %v532_v29, %v528_v8  ;;  %v542_v37 = vmul.f32 %v540_v56, %v528_v8 }
  0xfe   : > { %v533_v42 = vmul.f32 %v532_v29, %v526_v51  ;;  %v541_v12 = vmul.f32 %v540_v56, %v526_v51  ;;  %1139 = vrot.lane.b32.xlu1 %v2451_v55, %s1791_s20  ;;  %v516_v5 = vadd.f32 %v513_v30, %v494_v31  ;;  %v524_v28 = vadd.f32 %v521_v7, %v502_v2 }
  0xff   : > { %v537_v62 = vadd.f32 %v534_v26, %v515_v58  ;;  %v545_v60 = vadd.f32 %v542_v37, %v523_v43  ;;  %1137 = vrot.lane.b32.xlu0 %v2425_v1, %s1791_s20  ;;  %v576_v11 = vmul.f32 %v2106_v32, %v574_v52  ;;  %v575_v30 = vmul.f32 %v2109_v33, %v574_v52 }
 0x100   : > { %v536_v47 = vadd.f32 %v533_v42, %v514_v18  ;;  %v544_v23 = vadd.f32 %v541_v12, %v522_v0  ;;  %v548_v10 = vpop.permute.xlu1 %547  ;;  %v530_v6 = vpop.permute.xlu0 %529  ;;  %v583_v7 = vmul.f32 %v2109_v33, %v582_v59  ;;  %v596_v18 = vstv %s2461_s27  ;;  %s2612_s27 = sld [smem:[#allocation2 + $0x5d]] }
 0x101   : > { %v555_v17 = vmul.f32 %v554_v61, %v548_v10  ;;  %v563_v27 = vmul.f32 %v562_v36, %v548_v10  ;;  %v535_v41 = vmul.f32 %v532_v29, %v530_v6  ;;  %v543_v15 = vmul.f32 %v540_v56, %v530_v6  ;;  %v2489_v29 = vld [vmem:[%s1945_s4 + $0x88] sm:$0xff] }
 0x102   : > { %1179 = vrot.lane.b32.xlu1 %v2470_v19, %s1790_s23  ;;  %v584_v56 = vmul.f32 %v2106_v32, %v582_v59  ;;  %v604_v0 = vstv %s2463_s8  ;;  %v1222_v33 = vrot.slane %v2470_v19, 1  ;;  %v1223_v58 = vrot.slane %v2489_v29, 1  ;;  %s2630_s8 = sld [smem:[#allocation2 + $0x60]] }
 0x103   : > { %v558_v25 = vadd.f32 %v555_v17, %v536_v47  ;;  %v566_v20 = vadd.f32 %v563_v27, %v544_v23  ;;  %v538_v3 = vadd.f32 %v535_v41, %v516_v5  ;;  %v546_v13 = vadd.f32 %v543_v15, %v524_v28  ;;  %1177 = vrot.lane.b32.xlu0 %v2475_v46, %s1790_s23 }
 0x104   : > { %v552_v16 = vpop.permute.xlu1 %551  ;;  %v550_v49 = vpop.permute.xlu0 %549  ;;  %v1221_v32 = vrot.slane %v2475_v46, 1  ;;  %v577_v12 = vmul.f32 %v2116_v34, %v574_v52  ;;  %v585_v5 = vmul.f32 %v2116_v34, %v582_v59  ;;  %v2519_v34 = vsel %vm242_vm0, %v1222_v33, %v1223_v58 }
 0x105   : > { %v557_v31 = vmul.f32 %v554_v61, %v552_v16  ;;  %v565_v2 = vmul.f32 %v562_v36, %v552_v16  ;;  %v556_v54 = vmul.f32 %v554_v61, %v550_v49  ;;  %v564_v35 = vmul.f32 %v562_v36, %v550_v49 }
 0x106   : > { %1199 = vrot.lane.b32.xlu1 %v2475_v46, %s1791_s20  ;;  %v578_v8 = vadd.f32 %v575_v30, %v558_v25  ;;  %v586_v51 = vadd.f32 %v583_v7, %v566_v20  ;;  %v2523_v59 = vsel %vm242_vm0, %v1221_v32, %v1222_v33  ;;  %v2526_v49 = vstv %s2495_s17  ;;  %s2658_s17 = sld [smem:[#allocation2 + $0x66]] }
 0x107   : > { %v560_v43 = vadd.f32 %v557_v31, %v538_v3  ;;  %v568_v26 = vadd.f32 %v565_v2, %v546_v13  ;;  %v559_v37 = vadd.f32 %v556_v54, %v537_v62  ;;  %v567_v61 = vadd.f32 %v564_v35, %v545_v60  ;;  %1181 = vrot.lane.b32.xlu0 %v2489_v29, %s1790_s23 }
 0x108   : > { %v592_v36 = vpop.permute.xlu1 %591  ;;  %v590_v42 = vpop.permute.xlu0 %589  ;;  %v618_v62 = vstv %s2482_s14  ;;  %v626_v60 = vstv %s2484_s16  ;;  %s2642_s14 = sld [smem:[#allocation2 + $0x4d]]  ;;  %s2656_s16 = sld [smem:[#allocation2 + $0x30]] }
 0x109   : > { %v579_v28 = vadd.f32 %v576_v11, %v559_v37  ;;  %v587_v47 = vadd.f32 %v584_v56, %v567_v61  ;;  %v598_v23 = vmul.f32 %v596_v18, %v592_v36  ;;  %v606_v10 = vmul.f32 %v604_v0, %v592_v36 }
 0x10a   : > { %v597_v6 = vmul.f32 %v596_v18, %v590_v42  ;;  %v605_v17 = vmul.f32 %v604_v0, %v590_v42  ;;  %1203 = vrot.lane.b32.xlu1 %v2489_v29, %s1791_s20  ;;  %v580_v30 = vadd.f32 %v577_v12, %v560_v43  ;;  %v588_v7 = vadd.f32 %v585_v5, %v568_v26 }
 0x10b   : > { %v601_v27 = vadd.f32 %v598_v23, %v579_v28  ;;  %v609_v52 = vadd.f32 %v606_v10, %v587_v47  ;;  %1201 = vrot.lane.b32.xlu0 %v2470_v19, %s1791_s20  ;;  %v2529_v56 = vstv %s2497_s3  ;;  %v2550_v36 = vstv %s2511_s25  ;;  %s2690_s3 = sld [smem:[#allocation2 + $0x19]]  ;;  %s2692_s25 = sld [smem:[#allocation2 + $0x4f]] }
 0x10c   : > { %v600_v41 = vadd.f32 %v597_v6, %v578_v8  ;;  %v608_v15 = vadd.f32 %v605_v17, %v586_v51  ;;  %v612_v11 = vpop.permute.xlu1 %611  ;;  %v594_v25 = vpop.permute.xlu0 %593  ;;  %v2545_v51 = vsel %vm242_vm0, %v1223_v58, %v1221_v32  ;;  %v2553_v42 = vstv %s2513_s26  ;;  %s2706_s26 = sld [smem:[#allocation2 + $0x1a]] }
 0x10d   : > { %v619_v20 = vmul.f32 %v618_v62, %v612_v11  ;;  %v627_v3 = vmul.f32 %v626_v60, %v612_v11  ;;  %v599_v13 = vmul.f32 %v596_v18, %v594_v25  ;;  %v607_v16 = vmul.f32 %v604_v0, %v594_v25 }
 0x10e   : > { %1245 = vrot.lane.b32.xlu1 %v2519_v34, %s1790_s23  ;;  %v642_v18 = vmul.f32 %v2526_v49, %v2131_v38  ;;  %v650_v0 = vmul.f32 %v2529_v56, %v2131_v38  ;;  %v1288_v12 = vrot.slane %v2470_v19, 2  ;;  %v1289_v38 = vrot.slane %v2489_v29, 2 }
 0x10f   : > { %v2533_v33 = vadd.f32 %v619_v20, %v600_v41  ;;  %v2535_v31 = vadd.f32 %v627_v3, %v608_v15  ;;  %v602_v2 = vadd.f32 %v599_v13, %v580_v30  ;;  %v610_v54 = vadd.f32 %v607_v16, %v588_v7  ;;  %1243 = vrot.lane.b32.xlu0 %v2523_v59, %s1790_s23 }
 0x110   : > { %v616_v35 = vpop.permute.xlu1 %615  ;;  %v614_v8 = vpop.permute.xlu0 %613  ;;  %v1287_v10 = vrot.slane %v2475_v46, 2  ;;  %v706_v3 = vstv %s1519_s19  ;;  %v714_v13 = vstv %s1520_s29  ;;  %v2622_v16 = vmul.f32 %v2526_v49, %v2135_v39  ;;  %s2708_s19 = sld [smem:[#allocation2 + $0x50]]  ;;  %s2762_s29 = sld [smem:[#allocation2 + $0x1b]] }
 0x111   : > { %v621_v43 = vmul.f32 %v618_v62, %v616_v35  ;;  %v629_v26 = vmul.f32 %v626_v60, %v616_v35  ;;  %v620_v37 = vmul.f32 %v618_v62, %v614_v8  ;;  %v628_v61 = vmul.f32 %v626_v60, %v614_v8 }
 0x112   : > { %1265 = vrot.lane.b32.xlu1 %v2523_v59, %s1791_s20  ;;  %v2586_v41 = vsel %vm309_vm1, %v1287_v10, %v1288_v12  ;;  %v2598_v30 = vsel %vm309_vm1, %v1289_v38, %v1287_v10  ;;  %v844_v35 = vstv %s1535_s5  ;;  %v2648_v8 = vmul.f32 %v714_v13, %v2158_v44  ;;  %s2818_s5 = sld [smem:[#allocation2 + $0x1c]] }
 0x113   : > { %v2557_v5 = vadd.f32 %v621_v43, %v602_v2  ;;  %v2559_v28 = vadd.f32 %v629_v26, %v610_v54  ;;  %v623_v58 = vadd.f32 %v620_v37, %v601_v27  ;;  %v631_v32 = vadd.f32 %v628_v61, %v609_v52  ;;  %1247 = vrot.lane.b32.xlu0 %v2545_v51, %s1790_s23  ;;  %v3235_v26 = vld [vmem:[#allocation11_spill] sm:$0xff] }
 0x114   : > { %v658_v47 = vpop.permute.xlu1 %657  ;;  %v2563_v23 = vpop.permute.xlu0 %655  ;;  %v2578_v27 = vsel %vm309_vm1, %v1288_v12, %v1289_v38  ;;  %3233 = vst [vmem:[#allocation12_spill] sm:$0xff] %v2586_v41  ;;  %3234 = vst [vmem:[#allocation13_spill] sm:$0xff] %v2598_v30  ;;  %v2626_v2 = vmul.f32 %v2529_v56, %v2135_v39  ;;  %v2634_v54 = vmul.f32 %v2526_v49, %v2143_v40  ;;  %v902_v61 = vstv %s1540_s6  ;;  %s2820_s6 = sld [smem:[#allocation2 + $0x52]] }
 0x115   : > { %v645_v6 = vadd.f32 %v642_v18, %v623_v58  ;;  %v653_v17 = vadd.f32 %v650_v0, %v631_v32  ;;  %v664_v19 = vmul.f32 %v2550_v36, %v658_v47  ;;  %v672_v29 = vmul.f32 %v2553_v42, %v658_v47 }
 0x116   : > { %1269 = vrot.lane.b32.xlu1 %v2545_v51, %s1791_s20  ;;  %v2638_v18 = vmul.f32 %v2529_v56, %v2143_v40  ;;  %v836_v0 = vstv %s1534_s30  ;;  %v2645_v39 = vmul.f32 %v706_v3, %v2158_v44  ;;  %v2651_v43 = vmul.f32 %v706_v3, %v2162_v45  ;;  %s2764_s30 = sld [smem:[#allocation2 + $0x51]] }
 0x117   : > { %v2570_v62 = vadd.f32 %v664_v19, %v645_v6  ;;  %v2572_v60 = vadd.f32 %v672_v29, %v653_v17  ;;  %1267 = vrot.lane.b32.xlu0 %v2519_v34, %s1791_s20  ;;  %v2654_v49 = vmul.f32 %v714_v13, %v2162_v45  ;;  %v2665_v37 = vmul.f32 %v706_v3, %v3235_v26 }
 0x118   : > { %v2580_v46 = vpop.permute.xlu1 %677  ;;  %v2582_v52 = vpop.permute.xlu0 %659  ;;  %v2668_v44 = vmul.f32 %v714_v13, %v3235_v26  ;;  %v910_v12 = vstv %s1541_s7  ;;  %v2671_v45 = vmul.f32 %v836_v0, %v2225_v21  ;;  %v2674_v38 = vmul.f32 %v844_v35, %v2225_v21  ;;  %s2848_s7 = sld [smem:[#allocation2 + $0x1d]] }
 0x119   : > { %v2677_v58 = vmul.f32 %v836_v0, %v2229_v9  ;;  %v2680_v32 = vmul.f32 %v844_v35, %v2229_v9  ;;  %v2683_v47 = vmul.f32 %v836_v0, %v2247_v53  ;;  %v2686_v10 = vmul.f32 %v844_v35, %v2247_v53 }
 0x11a   : > { %1311 = vrot.lane.b32.xlu1 %v2578_v27, %s1790_s23  ;;  %v1032_v6 = vstv %s2610_s24  ;;  %v1040_v17 = vstv %s2612_s27  ;;  %v2695_v21 = vmul.f32 %v902_v61, %v2275_v48  ;;  %v2698_v9 = vmul.f32 %v910_v12, %v2275_v48  ;;  %s2850_s24 = sld [smem:[#allocation2 + $0x53]] }
 0x11b   : > { %1309 = vrot.lane.b32.xlu0 %v2586_v41, %s1790_s23  ;;  %v2701_v19 = vmul.f32 %v902_v61, %v2284_v63  ;;  %v2704_v53 = vmul.f32 %v910_v12, %v2284_v63  ;;  %v2715_v48 = vmul.f32 %v902_v61, %v2300_v14  ;;  %v2718_v13 = vmul.f32 %v910_v12, %v2300_v14  ;;  %s2860_s27 = sld [smem:[#allocation2 + $0x33]] }
 0x11c   : > { %v2592_v15 = vpop.permute.xlu1 %681  ;;  %v2594_v11 = vpop.permute.xlu0 %679  ;;  %v2721_v63 = vmul.f32 %v1032_v6, %v2375_v57  ;;  %v2724_v0 = vmul.f32 %v1040_v17, %v2375_v57  ;;  %v2727_v35 = vmul.f32 %v1032_v6, %v2379_v22  ;;  %v2730_v26 = vmul.f32 %v1040_v17, %v2379_v22 }
 0x11d   : > { %3236 = vst [vmem:[#allocation11_spill] sm:$0xff] %v2715_v48  ;;  %3237 = vst [vmem:[#allocation14_spill] sm:$0xff] %v2718_v13  ;;  %v2735_v61 = vmul.f32 %v1032_v6, %v2400_v24  ;;  %v2738_v14 = vmul.f32 %v1040_v17, %v2400_v24  ;;  %v692_v13 = vstv %s2642_s14  ;;  %v1236_v48 = vstv %s2658_s17  ;;  %s2901_s14 = sld [smem:[#allocation2 + $0x20]]  ;;  %s2925_s17 = sld [smem:[#allocation2 + $0x22]] }
 0x11e   : > { %1331 = vrot.lane.b32.xlu1 %v2586_v41, %s1791_s20  ;;  %3238 = vst [vmem:[#allocation15_spill] sm:$0xff] %v2721_v63  ;;  %3239 = vst [vmem:[#allocation16_spill] sm:$0xff] %v2727_v35  ;;  %v1106_v41 = vstv %s2630_s8  ;;  %v1228_v63 = vstv %s2656_s16  ;;  %v694_v35 = vmul.f32 %v692_v13, %v2594_v11  ;;  %s2876_s8 = sld [smem:[#allocation2 + $0x1f]]  ;;  %s2903_s16 = sld [smem:[#allocation2 + $0x56]] }
 0x11f   : > { %1313 = vrot.lane.b32.xlu0 %v2598_v30, %s1790_s23  ;;  %s2628_s23 = sld [smem:[#allocation2 + $0x2a]]  ;;  %3240 = vst [vmem:[#allocation17_spill] sm:$0xff] %v2730_v26  ;;  %3241 = vst [vmem:[#allocation18_spill] sm:$0xff] %v2735_v61  ;;  %v2754_v24 = vmul.f32 %v1106_v41, %v2425_v1  ;;  %v2788_v61 = vstv %s2692_s25  ;;  %s2935_s25 = sld [smem:[#allocation2 + $0x23]] }
 0x120   : > { %v2604_v7 = vpop.permute.xlu1 %723  ;;  %v2606_v25 = vpop.permute.xlu0 %721  ;;  %3242 = vst [vmem:[#allocation19_spill] sm:$0xff] %v2738_v14  ;;  %v2760_v14 = vmul.f32 %v1106_v41, %v2429_v50 }
 0x121   : > { %3244 = vst [vmem:[#allocation21_spill] sm:$0xff] %v2754_v24  ;;  %v2776_v24 = vmul.f32 %v1236_v48, %v2519_v34 }
 0x122   : > { %1335 = vrot.lane.b32.xlu1 %v2598_v30, %s1791_s20  ;;  %3246 = vst [vmem:[#allocation23_spill] sm:$0xff] %v2760_v14  ;;  %v2785_v14 = vstv %s2690_s3  ;;  %s2927_s3 = sld [smem:[#allocation2 + $0x58]] }
 0x123   : > { %1333 = vrot.lane.b32.xlu0 %v2578_v27, %s1791_s20  ;;  %s2640_s20 = sld [smem:[#allocation2 + $0x17]]  ;;  %3250 = vst [vmem:[#allocation27_spill] sm:$0xff] %v2776_v24 }
 0x124   : > { %v2616_v4 = vpop.permute.xlu1 %743  ;;  %v2618_v20 = vpop.permute.xlu0 %725 }
 0x125   : > { %v1098_v30 = vstv %s2628_s23  ;;  %s2862_s23 = sld [smem:[#allocation2 + $0x69]] }
 0x126   : > { %v2751_v6 = vmul.f32 %v1098_v30, %v2425_v1  ;;  %v2757_v17 = vmul.f32 %v1098_v30, %v2429_v50  ;;  %v2773_v1 = vmul.f32 %v1228_v63, %v2519_v34  ;;  %v2782_v50 = vmul.f32 %v1236_v48, %v2523_v59 }
 0x128   : > { %v2660_v40 = vpop.permute.xlu1 %747  ;;  %v2662_v56 = vpop.permute.xlu0 %745  ;;  %3243 = vst [vmem:[#allocation20_spill] sm:$0xff] %v2751_v6  ;;  %3245 = vst [vmem:[#allocation22_spill] sm:$0xff] %v2757_v17  ;;  %v2770_v6 = vmul.f32 %v1106_v41, %v2451_v55  ;;  %v2779_v17 = vmul.f32 %v1228_v63, %v2523_v59  ;;  %v2793_v41 = vstv %s2706_s26  ;;  %v644_v59 = vadd.f32 %v2622_v16, %v2533_v33  ;;  %s2937_s26 = sld [smem:[#allocation2 + $0x59]] }
 0x129   : > { %v684_v12 = vstv %s2640_s20  ;;  %3249 = vst [vmem:[#allocation26_spill] sm:$0xff] %v2773_v1  ;;  %3252 = vst [vmem:[#allocation29_spill] sm:$0xff] %v2782_v50  ;;  %v2796_v1 = vstv %s2708_s19  ;;  %v652_v50 = vadd.f32 %v2626_v2, %v2535_v31  ;;  %v673_v33 = vmul.f32 %v2553_v42, %v2582_v52  ;;  %s2878_s20 = sld [smem:[#allocation2 + $0x55]]  ;;  %s2955_s19 = sld [smem:[#allocation2 + $0x24]] }
 0x12a   : > { %v686_v57 = vmul.f32 %v684_v12, %v2594_v11  ;;  %v2767_v11 = vmul.f32 %v1098_v30, %v2451_v55  ;;  %3248 = vst [vmem:[#allocation25_spill] sm:$0xff] %v2770_v6  ;;  %3251 = vst [vmem:[#allocation28_spill] sm:$0xff] %v2779_v17  ;;  %v697_v55 = vadd.f32 %v694_v35, %v2572_v60  ;;  %v770_v6 = vstv %s2762_s29  ;;  %s2957_s29 = sld [smem:[#allocation2 + $0x5a]] }
 0x12b   : > { %v663_v17 = vmul.f32 %v2550_v36, %v2563_v23  ;;  %v646_v60 = vadd.f32 %v2634_v54, %v2557_v5  ;;  %v654_v35 = vadd.f32 %v2638_v18, %v2559_v28  ;;  %v685_v31 = vmul.f32 %v684_v12, %v2580_v46 }
 0x12c   : > { %v2710_v29 = vpop.permute.xlu1 %787  ;;  %v2712_v3 = vpop.permute.xlu0 %785  ;;  %3247 = vst [vmem:[#allocation24_spill] sm:$0xff] %v2767_v11  ;;  %v689_v30 = vadd.f32 %v686_v57, %v2570_v62  ;;  %v671_v62 = vmul.f32 %v2553_v42, %v2563_v23  ;;  %v665_v57 = vmul.f32 %v2550_v36, %v2582_v52  ;;  %v693_v23 = vmul.f32 %v692_v13, %v2580_v46 }
 0x12d   : > { %v687_v5 = vmul.f32 %v684_v12, %v2592_v15  ;;  %v695_v28 = vmul.f32 %v692_v13, %v2592_v15  ;;  %v719_v36 = vadd.f32 %v2648_v8, %v697_v55  ;;  %v730_v42 = vmul.f32 %v2785_v14, %v2604_v7 }
 0x12e   : > { %v711_v16 = vadd.f32 %v2645_v39, %v689_v30  ;;  %v738_v52 = vmul.f32 %v2788_v61, %v2604_v7  ;;  %v666_v18 = vadd.f32 %v663_v17, %v644_v59  ;;  %v674_v46 = vadd.f32 %v671_v62, %v652_v50 }
 0x12f   : > { %v778_v12 = vstv %s2764_s30  ;;  %v668_v11 = vadd.f32 %v665_v57, %v646_v60  ;;  %v676_v15 = vadd.f32 %v673_v33, %v654_v35  ;;  %v752_v39 = vmul.f32 %v2793_v41, %v2662_v56  ;;  %s2975_s30 = sld [smem:[#allocation2 + $0x25]] }
 0x130   : > { %v2746_v22 = vpop.permute.xlu1 %807  ;;  %v2748_v26 = vpop.permute.xlu0 %789  ;;  %v760_v8 = vmul.f32 %v2796_v1, %v2662_v56  ;;  %v2843_v7 = vmul.f32 %v1228_v63, %v2545_v51  ;;  %v2846_v13 = vmul.f32 %v1236_v48, %v2545_v51  ;;  %v688_v17 = vadd.f32 %v685_v31, %v666_v18  ;;  %v1662_v63 = vld [vmem:[%s1945_s4 + $0x50] sm:$0xff]  ;;  %v1663_v48 = vld [vmem:[%s1945_s4 + $0x48] sm:$0xff] }
 0x131   : > { %v696_v50 = vadd.f32 %v693_v23, %v674_v46  ;;  %v690_v30 = vadd.f32 %v687_v5, %v668_v11  ;;  %v698_v55 = vadd.f32 %v695_v28, %v676_v15  ;;  %v733_v59 = vadd.f32 %v730_v42, %v711_v16 }
 0x132   : > { %v741_v62 = vadd.f32 %v738_v52, %v719_v36  ;;  %v772_v35 = vmul.f32 %v1662_v63, %v770_v6  ;;  %v780_v51 = vmul.f32 %v1662_v63, %v778_v12  ;;  %v771_v57 = vmul.f32 %v1663_v48, %v770_v6 }
 0x133   : > { %v779_v33 = vmul.f32 %v1663_v48, %v778_v12  ;;  %v755_v31 = vadd.f32 %v752_v39, %v733_v59  ;;  %v792_v18 = vstv %s2818_s5  ;;  %v800_v46 = vstv %s2820_s6  ;;  %s2977_s5 = sld [smem:[#allocation2 + $0x5b]]  ;;  %s2996_s6 = sld [smem:[#allocation2 + $0x26]] }
 0x134   : > { %v2798_v34 = vpop.permute.xlu1 %811  ;;  %v2800_v24 = vpop.permute.xlu0 %809  ;;  %v763_v23 = vadd.f32 %v760_v8, %v741_v62  ;;  %v710_v11 = vadd.f32 %v2651_v43, %v688_v17  ;;  %v718_v5 = vadd.f32 %v2654_v49, %v696_v50  ;;  %v729_v28 = vmul.f32 %v2785_v14, %v2606_v25 }
 0x135   : > { %v737_v16 = vmul.f32 %v2788_v61, %v2606_v25  ;;  %v712_v36 = vadd.f32 %v2665_v37, %v690_v30  ;;  %v720_v42 = vadd.f32 %v2668_v44, %v698_v55  ;;  %v731_v52 = vmul.f32 %v2785_v14, %v2618_v20 }
 0x136   : > { %v739_v15 = vmul.f32 %v2788_v61, %v2618_v20  ;;  %v751_v25 = vmul.f32 %v2793_v41, %v2616_v4  ;;  %v759_v49 = vmul.f32 %v2796_v1, %v2616_v4  ;;  %v753_v37 = vmul.f32 %v2793_v41, %v2660_v40 }
 0x137   : > { %v761_v44 = vmul.f32 %v2796_v1, %v2660_v40  ;;  %v775_v61 = vadd.f32 %v772_v35, %v755_v31  ;;  %v783_v14 = vadd.f32 %v780_v51, %v763_v23  ;;  %v794_v39 = vmul.f32 %v792_v18, %v2710_v29  ;;  %v1664_v35 = vld [vmem:[%s1945_s4 + $0x58] sm:$0xff] }
 0x138   : > { %v2832_v2 = vpop.permute.xlu1 %853  ;;  %v2834_v54 = vpop.permute.xlu0 %851  ;;  %v802_v8 = vmul.f32 %v800_v46, %v2710_v29  ;;  %v732_v17 = vadd.f32 %v729_v28, %v710_v11  ;;  %v740_v50 = vadd.f32 %v737_v16, %v718_v5  ;;  %v814_v30 = vstv %s2848_s7  ;;  %s2998_s7 = sld [smem:[#allocation2 + $0x5c]] }
 0x139   : > { %v822_v55 = vstv %s2850_s24  ;;  %v734_v4 = vadd.f32 %v731_v52, %v712_v36  ;;  %v742_v59 = vadd.f32 %v739_v15, %v720_v42  ;;  %v816_v41 = vmul.f32 %v814_v30, %v2800_v24  ;;  %s3006_s24 = sld [smem:[#allocation2 + $0x28]] }
 0x13a   : > { %v824_v40 = vmul.f32 %v822_v55, %v2800_v24  ;;  %v754_v62 = vadd.f32 %v751_v25, %v732_v17  ;;  %v762_v63 = vadd.f32 %v759_v49, %v740_v50  ;;  %v773_v51 = vmul.f32 %v1664_v35, %v770_v6 }
 0x13b   : > { %v781_v29 = vmul.f32 %v1664_v35, %v778_v12  ;;  %v756_v31 = vadd.f32 %v753_v37, %v734_v4  ;;  %v764_v23 = vadd.f32 %v761_v44, %v742_v59  ;;  %v797_v11 = vadd.f32 %v794_v39, %v775_v61 }
 0x13c   : > { %v2852_v56 = vpop.permute.xlu1 %873  ;;  %v2854_v60 = vpop.permute.xlu0 %855  ;;  %v805_v5 = vadd.f32 %v802_v8, %v783_v14  ;;  %v2908_v24 = vstv %s2860_s27  ;;  %v2911_v28 = vstv %s2862_s23  ;;  %v793_v16 = vmul.f32 %v792_v18, %v2712_v3  ;;  %s3008_s27 = sld [smem:[#allocation2 + $0x5e]]  ;;  %s3021_s23 = sld [smem:[#allocation2 + $0x29]] }
 0x13d   : > { %v801_v6 = vmul.f32 %v800_v46, %v2712_v3  ;;  %v819_v36 = vadd.f32 %v816_v41, %v797_v11  ;;  %v858_v42 = vstv %s2876_s8  ;;  %v866_v52 = vstv %s2878_s20  ;;  %s3023_s8 = sld [smem:[#allocation2 + $0x5f]]  ;;  %s3029_s20 = sld [smem:[#allocation2 + $0x2b]] }
 0x13e   : > { %v827_v12 = vadd.f32 %v824_v40, %v805_v5  ;;  %v774_v25 = vadd.f32 %v771_v57, %v754_v62  ;;  %v782_v49 = vadd.f32 %v779_v33, %v762_v63  ;;  %v815_v37 = vmul.f32 %v814_v30, %v2746_v22 }
 0x13f   : > { %v823_v44 = vmul.f32 %v822_v55, %v2746_v22  ;;  %v776_v14 = vadd.f32 %v773_v51, %v756_v31  ;;  %v784_v39 = vadd.f32 %v781_v29, %v764_v23  ;;  %v795_v8 = vmul.f32 %v792_v18, %v2748_v26 }
 0x140   : > { %v2880_v43 = vpop.permute.xlu1 %877  ;;  %v2890_v20 = vpop.permute.xlu0 %875  ;;  %v803_v3 = vmul.f32 %v800_v46, %v2748_v26  ;;  %v796_v57 = vadd.f32 %v793_v16, %v774_v25  ;;  %v804_v33 = vadd.f32 %v801_v6, %v782_v49  ;;  %v817_v17 = vmul.f32 %v814_v30, %v2798_v34 }
 0x141   : > { %v825_v22 = vmul.f32 %v822_v55, %v2798_v34  ;;  %v841_v50 = vadd.f32 %v2671_v45, %v819_v36  ;;  %v849_v4 = vadd.f32 %v2674_v38, %v827_v12  ;;  %v860_v18 = vmul.f32 %v858_v42, %v2832_v2 }
 0x142   : > { %v868_v26 = vmul.f32 %v866_v52, %v2832_v2  ;;  %v818_v59 = vadd.f32 %v815_v37, %v796_v57  ;;  %v826_v41 = vadd.f32 %v823_v44, %v804_v33  ;;  %v880_v40 = vstv %s2901_s14  ;;  %s3031_s14 = sld [smem:[#allocation2 + $0x61]] }
 0x143   : > { %v888_v30 = vstv %s2903_s16  ;;  %v798_v34 = vadd.f32 %v795_v8, %v776_v14  ;;  %v806_v55 = vadd.f32 %v803_v3, %v784_v39  ;;  %v882_v45 = vmul.f32 %v880_v40, %v2890_v20  ;;  %s3040_s16 = sld [smem:[#allocation2 + $0x2d]] }
 0x144   : > { %v2898_v1 = vpop.permute.xlu1 %919  ;;  %v2905_v48 = vpop.permute.xlu0 %917  ;;  %v890_v38 = vmul.f32 %v888_v30, %v2890_v20  ;;  %v2947_v2 = vmul.f32 %v2908_v24, %v2578_v27  ;;  %v2951_v63 = vmul.f32 %v2911_v28, %v2578_v27  ;;  %v859_v35 = vmul.f32 %v858_v42, %v2834_v54 }
 0x145   : > { %v867_v51 = vmul.f32 %v866_v52, %v2834_v54  ;;  %v820_v29 = vadd.f32 %v817_v17, %v798_v34  ;;  %v828_v20 = vadd.f32 %v825_v22, %v806_v55  ;;  %v863_v31 = vadd.f32 %v860_v18, %v841_v50  ;;  %v1665_v34 = vld [vmem:[%s1945_s4 + $0x68] sm:$0xff] }
 0x146   : > { %v871_v23 = vadd.f32 %v868_v26, %v849_v4  ;;  %v840_v27 = vadd.f32 %v2677_v58, %v818_v59  ;;  %v848_v5 = vadd.f32 %v2680_v32, %v826_v41  ;;  %v881_v16 = vmul.f32 %v880_v40, %v2852_v56 }
 0x147   : > { %v889_v54 = vmul.f32 %v888_v30, %v2852_v56  ;;  %v885_v36 = vadd.f32 %v882_v45, %v863_v31  ;;  %v924_v25 = vstv %s2925_s17  ;;  %v932_v49 = vstv %s2927_s3  ;;  %s3042_s17 = sld [smem:[#allocation2 + $0x63]]  ;;  %s3058_s3 = sld [smem:[#allocation2 + $0x2c]] }
 0x148   : > { %v2917_v15 = vpop.permute.xlu1 %939  ;;  %v2921_v61 = vpop.permute.xlu0 %921  ;;  %v893_v12 = vadd.f32 %v890_v38, %v871_v23  ;;  %v862_v37 = vadd.f32 %v859_v35, %v840_v27  ;;  %v870_v44 = vadd.f32 %v867_v51, %v848_v5  ;;  %v861_v14 = vmul.f32 %v858_v42, %v2854_v60 }
 0x149   : > { %v869_v39 = vmul.f32 %v866_v52, %v2854_v60  ;;  %v842_v58 = vadd.f32 %v2683_v47, %v820_v29  ;;  %v850_v32 = vadd.f32 %v2686_v10, %v828_v20  ;;  %v946_v8 = vstv %s2935_s25  ;;  %s3060_s25 = sld [smem:[#allocation2 + $0x62]] }
 0x14a   : > { %v954_v3 = vstv %s2937_s26  ;;  %v884_v57 = vadd.f32 %v881_v16, %v862_v37  ;;  %v892_v33 = vadd.f32 %v889_v54, %v870_v44  ;;  %v883_v42 = vmul.f32 %v880_v40, %v2880_v43  ;;  %v1666_v44 = vld [vmem:[%s1945_s4 + $0x60] sm:$0xff]  ;;  %s3076_s26 = sld [smem:[#allocation2 + $0x2e]] }
 0x14b   : > { %v891_v60 = vmul.f32 %v888_v30, %v2880_v43  ;;  %v907_v10 = vadd.f32 %v2695_v21, %v885_v36  ;;  %v915_v52 = vadd.f32 %v2698_v9, %v893_v12  ;;  %v926_v17 = vmul.f32 %v924_v25, %v2898_v1  ;;  %v3253_v36 = vld [vmem:[#allocation11_spill] sm:$0xff] }
 0x14c   : > { %v2939_v46 = vpop.permute.xlu1 %943  ;;  %v934_v22 = vmul.f32 %v932_v49, %v2898_v1  ;;  %v864_v50 = vadd.f32 %v861_v14, %v842_v58  ;;  %v872_v4 = vadd.f32 %v869_v39, %v850_v32  ;;  %v966_v18 = vstv %s2955_s19  ;;  %s3078_s19 = sld [smem:[#allocation2 + $0x64]] }
 0x14d   : > { %v942_v62 = vpop.permute.xlu0 %941  ;;  %v974_v26 = vstv %s2957_s29  ;;  %v968_v40 = vmul.f32 %v1665_v34, %v966_v18  ;;  %v925_v21 = vmul.f32 %v924_v25, %v2905_v48  ;;  %v933_v9 = vmul.f32 %v932_v49, %v2905_v48  ;;  %s3096_s29 = sld [smem:[#allocation2 + $0x2f]] }
 0x14e   : > { %v948_v59 = vmul.f32 %v946_v8, %v942_v62  ;;  %v956_v41 = vmul.f32 %v954_v3, %v942_v62  ;;  %v976_v55 = vmul.f32 %v1665_v34, %v974_v26  ;;  %v886_v30 = vadd.f32 %v883_v42, %v864_v50 }
 0x14f   : > { %v894_v45 = vadd.f32 %v891_v60, %v872_v4  ;;  %v929_v38 = vadd.f32 %v926_v17, %v907_v10  ;;  %v937_v62 = vadd.f32 %v934_v22, %v915_v52  ;;  %v906_v35 = vadd.f32 %v2701_v19, %v884_v57  ;;  %v1667_v17 = vld [vmem:[%s1945_s4 + $0x70] sm:$0xff] }
 0x150   : > { %v2959_v11 = vpop.permute.xlu1 %983  ;;  %v914_v51 = vadd.f32 %v2704_v53, %v892_v33  ;;  %v947_v29 = vmul.f32 %v946_v8, %v2917_v15  ;;  %v955_v20 = vmul.f32 %v954_v3, %v2917_v15  ;;  %v927_v31 = vmul.f32 %v924_v25, %v2921_v61  ;;  %v3254_v15 = vld [vmem:[#allocation14_spill] sm:$0xff] }
 0x151   : > { %v2965_v6 = vpop.permute.xlu0 %981  ;;  %v935_v48 = vmul.f32 %v932_v49, %v2921_v61  ;;  %v951_v23 = vadd.f32 %v948_v59, %v929_v38  ;;  %v959_v27 = vadd.f32 %v956_v41, %v937_v62  ;;  %v988_v5 = vstv %s2975_s30  ;;  %s3098_s30 = sld [smem:[#allocation2 + $0x65]] }
 0x152   : > { %v996_v16 = vstv %s2977_s5  ;;  %v928_v53 = vadd.f32 %v925_v21, %v906_v35  ;;  %v936_v54 = vadd.f32 %v933_v9, %v914_v51  ;;  %v908_v12 = vadd.f32 %v3253_v36, %v886_v30  ;;  %s3104_s5 = sld [smem:[#allocation2 + $0x31]] }
 0x153   : > { %v916_v37 = vadd.f32 %v3254_v15, %v894_v45  ;;  %v949_v61 = vmul.f32 %v946_v8, %v2939_v46  ;;  %v957_v49 = vmul.f32 %v954_v3, %v2939_v46  ;;  %v967_v14 = vmul.f32 %v1666_v44, %v966_v18 }
 0x154   : > { %v2979_v56 = vpop.permute.xlu1 %1003  ;;  %v975_v39 = vmul.f32 %v1666_v44, %v974_v26  ;;  %v950_v58 = vadd.f32 %v947_v29, %v928_v53  ;;  %v958_v32 = vadd.f32 %v955_v20, %v936_v54  ;;  %v930_v57 = vadd.f32 %v927_v31, %v908_v12  ;;  %v3255_v44 = vld [vmem:[#allocation15_spill] sm:$0xff] }
 0x155   : > { %v2983_v47 = vpop.permute.xlu0 %985  ;;  %v938_v33 = vadd.f32 %v935_v48, %v916_v37  ;;  %v971_v42 = vadd.f32 %v968_v40, %v951_v23  ;;  %v979_v60 = vadd.f32 %v976_v55, %v959_v27  ;;  %v990_v8 = vmul.f32 %v988_v5, %v2959_v11 }
 0x156   : > { %v998_v46 = vmul.f32 %v996_v16, %v2959_v11  ;;  %v1010_v10 = vstv %s2996_s6  ;;  %v1018_v52 = vstv %s2998_s7  ;;  %v969_v22 = vmul.f32 %v1667_v17, %v966_v18  ;;  %s3106_s6 = sld [smem:[#allocation2 + $0x67]]  ;;  %s3121_s7 = sld [smem:[#allocation2 + $0x32]] }
 0x157   : > { %v977_v50 = vmul.f32 %v1667_v17, %v974_v26  ;;  %v952_v59 = vadd.f32 %v949_v61, %v930_v57  ;;  %v960_v41 = vadd.f32 %v957_v49, %v938_v33  ;;  %v989_v11 = vmul.f32 %v988_v5, %v2965_v6  ;;  %v3256_v17 = vld [vmem:[#allocation16_spill] sm:$0xff] }
 0x158   : > { %v2992_v43 = vpop.permute.xlu1 %1007  ;;  %v997_v55 = vmul.f32 %v996_v16, %v2965_v6  ;;  %v1054_v30 = vstv %s3006_s24  ;;  %v1062_v45 = vstv %s3008_s27  ;;  %v993_v21 = vadd.f32 %v990_v8, %v971_v42  ;;  %s3123_s24 = sld [smem:[#allocation2 + $0x68]]  ;;  %s3131_s27 = sld [smem:[#allocation2 + $0x6a]] }
 0x159   : > { %v1006_v1 = vpop.permute.xlu0 %1005  ;;  %v1001_v9 = vadd.f32 %v998_v46, %v979_v60  ;;  %v970_v38 = vadd.f32 %v967_v14, %v950_v58  ;;  %v978_v18 = vadd.f32 %v975_v39, %v958_v32  ;;  %v1019_v62 = vmul.f32 %v1018_v52, %v2979_v56 }
 0x15a   : > { %v1012_v34 = vmul.f32 %v1010_v10, %v1006_v1  ;;  %v1020_v40 = vmul.f32 %v1018_v52, %v1006_v1  ;;  %v1011_v1 = vmul.f32 %v1010_v10, %v2979_v56  ;;  %v991_v6 = vmul.f32 %v988_v5, %v2983_v47 }
 0x15b   : > { %v999_v35 = vmul.f32 %v996_v16, %v2983_v47  ;;  %v972_v29 = vadd.f32 %v969_v22, %v952_v59  ;;  %v980_v20 = vadd.f32 %v977_v50, %v960_v41  ;;  %v992_v23 = vadd.f32 %v989_v11, %v970_v38 }
 0x15c   : > { %v3012_v19 = vpop.permute.xlu1 %1049  ;;  %v1015_v31 = vadd.f32 %v1012_v34, %v993_v21  ;;  %v1023_v48 = vadd.f32 %v1020_v40, %v1001_v9  ;;  %v1000_v27 = vadd.f32 %v997_v55, %v978_v18  ;;  %v1013_v53 = vmul.f32 %v1010_v10, %v2992_v43  ;;  %v3258_v55 = vld [vmem:[#allocation18_spill] sm:$0xff]  ;;  %v3259_v9 = vld [vmem:[#allocation19_spill] sm:$0xff] }
 0x15d   : > { %v3016_v25 = vpop.permute.xlu0 %1047  ;;  %v1021_v54 = vmul.f32 %v1018_v52, %v2992_v43  ;;  %v1076_v36 = vstv %s3021_s23  ;;  %v1084_v12 = vstv %s3023_s8  ;;  %v3053_v15 = vstv %s3029_s20  ;;  %s3141_s23 = sld [smem:[#allocation2 + $0x35]]  ;;  %s3143_s8 = sld [smem:[#allocation2 + $0x6b]] }
 0x15e   : > { %v3056_v56 = vstv %s3031_s14  ;;  %v1014_v5 = vadd.f32 %v1011_v1, %v992_v23  ;;  %v1022_v16 = vadd.f32 %v1019_v62, %v1000_v27  ;;  %v994_v37 = vadd.f32 %v991_v6, %v972_v29  ;;  %v1668_v23 = vld [vmem:[%s1945_s4 + $0x78] sm:$0xff]  ;;  %s1597_s20 = smul.u32 48, %s1941_s28 }
 0x15f   : > { %v1002_v61 = vadd.f32 %v999_v35, %v980_v20  ;;  %v1037_v43 = vadd.f32 %v3255_v44, %v1015_v31  ;;  %v1045_v14 = vadd.f32 %v2724_v0, %v1023_v48  ;;  %v1056_v39 = vmul.f32 %v1054_v30, %v3012_v19  ;;  %v3257_v0 = vld [vmem:[#allocation17_spill] sm:$0xff]  ;;  %s1598_s14 = smul.u32 768, %s1831_s13 }
 0x160   : > { %v3027_v3 = vpop.permute.xlu1 %1069  ;;  %v1064_v58 = vmul.f32 %v1062_v45, %v3012_v19  ;;  %v1016_v32 = vadd.f32 %v1013_v53, %v994_v37  ;;  %v3067_v33 = vstv %s3040_s16  ;;  %v3070_v42 = vstv %s3042_s17  ;;  %s173_s16 = scalar_lea.vmem [#allocation7], %s1597_s20 }
 0x161   : > { %v1052_v4 = vpop.permute.xlu0 %1051  ;;  %v1024_v57 = vadd.f32 %v1021_v54, %v1002_v61  ;;  %v1055_v60 = vmul.f32 %v1054_v30, %v3016_v25  ;;  %v1063_v8 = vmul.f32 %v1062_v45, %v3016_v25  ;;  %v1036_v22 = vadd.f32 %v3256_v17, %v1014_v5  ;;  %v3261_v61 = vld [vmem:[#allocation21_spill] sm:$0xff]  ;;  %v3263_v17 = vld [vmem:[#allocation23_spill] sm:$0xff]  ;;  %s1374_s17 = sshll.u32 %s173_s16, 4  ;;  %s3168_s17 = int_to_ptr.vmem [resolvable:$true] %s1374_s17 }
 0x162   : > { %v1044_v50 = vadd.f32 %v3257_v0, %v1022_v16  ;;  %v1057_v59 = vmul.f32 %v1054_v30, %v1052_v4  ;;  %v1065_v41 = vmul.f32 %v1062_v45, %v1052_v4  ;;  %v1059_v34 = vadd.f32 %v1056_v39, %v1037_v43  ;;  %v3260_v16 = vld [vmem:[#allocation20_spill] sm:$0xff] }
 0x163   : > { %v1067_v40 = vadd.f32 %v1064_v58, %v1045_v14  ;;  %v1077_v25 = vmul.f32 %v1076_v36, %v3027_v3  ;;  %v1085_v11 = vmul.f32 %v1084_v12, %v3027_v3  ;;  %v1038_v21 = vadd.f32 %v3258_v55, %v1016_v32  ;;  %v3265_v55 = vld [vmem:[#allocation25_spill] sm:$0xff] }
 0x164   : > { %v1074_v26 = vpop.permute.xlu1 %1073  ;;  %v1046_v38 = vadd.f32 %v3259_v9, %v1024_v57  ;;  %v1058_v45 = vadd.f32 %v1055_v60, %v1036_v22  ;;  %v1066_v18 = vadd.f32 %v1063_v8, %v1044_v50  ;;  %v1142_v29 = vstv %s3058_s3 }
 0x165   : > { %v1072_v51 = vpop.permute.xlu0 %1071  ;;  %v1079_v30 = vmul.f32 %v1076_v36, %v1074_v26  ;;  %v1087_v4 = vmul.f32 %v1084_v12, %v1074_v26  ;;  %v1060_v35 = vadd.f32 %v1057_v59, %v1038_v21  ;;  %v1150_v20 = vstv %s3060_s25  ;;  %s3166_s25 = scalar_lea.hbm %s3213_s2, %s1598_s14 }
 0x166   : > { %v1078_v46 = vmul.f32 %v1076_v36, %v1072_v51  ;;  %v1086_v10 = vmul.f32 %v1084_v12, %v1072_v51  ;;  %v1068_v51 = vadd.f32 %v1065_v41, %v1046_v38  ;;  %v1080_v48 = vadd.f32 %v1077_v25, %v1058_v45  ;;  %v1669_v36 = vld [vmem:[%s1945_s4 + $0x80] sm:$0xff] }
 0x167   : > { %v1088_v3 = vadd.f32 %v1085_v11, %v1066_v18  ;;  %v3088_v27 = vmul.f32 %v1668_v23, %v3067_v33  ;;  %v3091_v53 = vmul.f32 %v1668_v23, %v3070_v42  ;;  %v1082_v26 = vadd.f32 %v1079_v30, %v1060_v35  ;;  %v3264_v11 = vld [vmem:[#allocation24_spill] sm:$0xff] }
 0x168   : > { %v1116_v47 = vpop.permute.xlu1 %1115  ;;  %v1081_v1 = vadd.f32 %v1078_v46, %v1059_v34  ;;  %v1089_v62 = vadd.f32 %v1086_v10, %v1067_v40  ;;  %v1090_v54 = vadd.f32 %v1087_v4, %v1068_v51  ;;  %v1164_v12 = vmul.f32 %v1669_v36, %v3067_v33  ;;  %v3262_v46 = vld [vmem:[#allocation22_spill] sm:$0xff] }
 0x169   : > { %v1114_v49 = vpop.permute.xlu0 %1113  ;;  %v1172_v5 = vmul.f32 %v1669_v36, %v3070_v42  ;;  %v1122_v43 = vmul.f32 %v3053_v15, %v1116_v47  ;;  %v1130_v14 = vmul.f32 %v3056_v56, %v1116_v47  ;;  %v1184_v57 = vstv %s3076_s26  ;;  %s1361_s26 = scalar_lea.sflag [#allocation4], %s1941_s28 }
 0x16a   : > { %v1103_v37 = vadd.f32 %v3260_v16, %v1081_v1  ;;  %v1111_v44 = vadd.f32 %v3261_v61, %v1089_v62  ;;  %v1121_v58 = vmul.f32 %v3053_v15, %v1114_v49  ;;  %v1129_v32 = vmul.f32 %v3056_v56, %v1114_v49  ;;  %v1670_v1 = vld [vmem:[%s1945_s4 + $0x88] sm:$0xff]  ;;  %s3129_s4 = sld [smem:[#allocation2 + $0x34]] }
 0x16b   : > { %v1192_v60 = vstv %s3078_s19  ;;  %v1102_v10 = vadd.f32 %v3262_v46, %v1080_v48  ;;  %v1110_v22 = vadd.f32 %v3263_v17, %v1088_v3  ;;  %v1104_v49 = vadd.f32 %v3264_v11, %v1082_v26  ;;  %s1714_s19 = scalar_lea.vmem %s3168_s17, 768 }
 0x16c   : > { %v1136_v52 = vpop.permute.xlu1 %1135  ;;  %v1125_v40 = vadd.f32 %v1122_v43, %v1103_v37  ;;  %v1133_v25 = vadd.f32 %v1130_v14, %v1111_v44  ;;  %v1112_v21 = vadd.f32 %v3265_v55, %v1090_v54  ;;  %v1250_v48 = vstv %s3104_s5  ;;  %v3266_v55 = vld [vmem:[#allocation12_spill] sm:$0xff]  ;;  %p1715_p12 = scmp.ne.s32.totalorder %s3168_s17, %s1714_s19 }
 0x16d   : > { %v1118_v19 = vpop.permute.xlu0 %1117  ;;  %v1143_v59 = vmul.f32 %v1142_v29, %v1136_v52  ;;  %v1151_v47 = vmul.f32 %v1150_v20, %v1136_v52  ;;  %v1124_v38 = vadd.f32 %v1121_v58, %v1102_v10  ;;  %v1132_v30 = vadd.f32 %v1129_v32, %v1110_v22 }
 0x16e   : > { %v1123_v41 = vmul.f32 %v3053_v15, %v1118_v19  ;;  %v1131_v34 = vmul.f32 %v3056_v56, %v1118_v19  ;;  %v1165_v56 = vmul.f32 %v1670_v1, %v3067_v33  ;;  %v1173_v19 = vmul.f32 %v1670_v1, %v3070_v42  ;;  %v3267_v1 = vld [vmem:[#allocation28_spill] sm:$0xff]  ;;  %p1716_p0 = pnand %p1715_p12, %p3272_p13 }
 0x16f   : > { %v1146_v62 = vadd.f32 %v1143_v59, %v1124_v38  ;;  %v1154_v35 = vadd.f32 %v1151_v47, %v1132_v30  ;;  %v1258_v3 = vstv %s3106_s6 }
 0x170   : > { %v1140_v6 = vpop.permute.xlu1 %1139  ;;  %v1126_v51 = vadd.f32 %v1123_v41, %v1104_v49  ;;  %p1717_p3 = pneg %p1716_p0 }
 0x171   : > { %v1138_v31 = vpop.permute.xlu0 %1137  ;;  %v1145_v4 = vmul.f32 %v1142_v29, %v1140_v6  ;;  %v1153_v45 = vmul.f32 %v1150_v20, %v1140_v6  ;;  %v1214_v6 = vstv %s3098_s30  ;;  %v1166_v44 = vadd.f32 %v3088_v27, %v1146_v62 }
 0x172   : > { %v1144_v0 = vmul.f32 %v1142_v29, %v1138_v31  ;;  %v1152_v50 = vmul.f32 %v1150_v20, %v1138_v31  ;;  %v1134_v31 = vadd.f32 %v1131_v34, %v1112_v21  ;;  %v1206_v29 = vstv %s3096_s29  ;;  %s1792_s29 = smov [#allocation7]  }
 0x173   : > { %v1148_v23 = vadd.f32 %v1145_v4, %v1126_v51  ;;  %v1174_v43 = vadd.f32 %v3091_v53, %v1154_v35  ;;  %v1272_v34 = vstv %s3121_s7  ;;  %v1295_v21 = vmul.f32 %v2908_v24, %v3266_v55  ;;  %s1718_s30 = sshll.u32 %s1792_s29, 4  ;;  %s1719_s30 = int_to_ptr.vmem [resolvable:$false] %s1718_s30 }
 0x174   : > { %v1180_v39 = vpop.permute.xlu1 %1179  ;;  %v1147_v52 = vadd.f32 %v1144_v0, %v1125_v40  ;;  %v1155_v15 = vadd.f32 %v1152_v50, %v1133_v25  ;;  %v1156_v26 = vadd.f32 %v1153_v45, %v1134_v31  ;;  %v3269_v31 = vld [vmem:[#allocation26_spill] sm:$0xff]  ;;  %s1720_s5 = scalar_lea.vmem %s1719_s30, 1536  ;;  %p1721_p10 = scmp.lt.s32.totalorder %s3168_s17, %s1719_s30 }
 0x175   : > { %v1178_v8 = vpop.permute.xlu0 %1177  ;;  %v1186_v37 = vmul.f32 %v1184_v57, %v1180_v39  ;;  %v1194_v61 = vmul.f32 %v1192_v60, %v1180_v39  ;;  %v1168_v39 = vadd.f32 %v1165_v56, %v1148_v23  ;;  %p1722_p5 = scmp.lt.s32.totalorder %s1720_s5, %s1714_s19 }
 0x176   : > { %v1185_v54 = vmul.f32 %v1184_v57, %v1178_v8  ;;  %v1193_v36 = vmul.f32 %v1192_v60, %v1178_v8  ;;  %v1167_v16 = vadd.f32 %v1164_v12, %v1147_v52  ;;  %v1175_v42 = vadd.f32 %v1172_v5, %v1155_v15 }
 0x177   : > { %v1176_v22 = vadd.f32 %v1173_v19, %v1156_v26  ;;  %v1316_v52 = vstv %s3129_s4  ;;  %v1324_v15 = vstv %s3131_s27  ;;  %v3268_v19 = vld [vmem:[#allocation29_spill] sm:$0xff]  ;;  %p1723_p1 = por %p1722_p5, %p1721_p10 }
 0x178   : > { %v1200_v9 = vpop.permute.xlu1 %1199  ;;  %v1188_v5 = vadd.f32 %v1185_v54, %v1166_v44  ;;  %v1196_v17 = vadd.f32 %v1193_v36, %v1174_v43  ;;  %v1189_v50 = vadd.f32 %v1186_v37, %v1167_v16  ;;  %v1197_v59 = vadd.f32 %v1194_v61, %v1175_v42 }
 0x179   : > { %v1182_v18 = vpop.permute.xlu0 %1181  ;;  %v1207_v14 = vmul.f32 %v1206_v29, %v1200_v9  ;;  %v1215_v58 = vmul.f32 %v1214_v6, %v1200_v9  ;;  %v1303_v9 = vmul.f32 %v2911_v28, %v3266_v55  ;;  %p1724_p6 = pnand %p1723_p1, %p1717_p3 }
 0x17a   : > { %v1187_v32 = vmul.f32 %v1184_v57, %v1182_v18  ;;  %v1195_v46 = vmul.f32 %v1192_v60, %v1182_v18  ;;  %v1280_v57 = vstv %s3123_s24 }
 0x17b   : > { %v1210_v41 = vadd.f32 %v1207_v14, %v1188_v5  ;;  %v1218_v53 = vadd.f32 %v1215_v58, %v1196_v17 }
 0x17c   : > { %v1204_v20 = vpop.permute.xlu1 %1203  ;;  %v1190_v60 = vadd.f32 %v1187_v32, %v1168_v39  ;;  %v1198_v40 = vadd.f32 %v1195_v46, %v1176_v22  ;;  %v1338_v22 = vstv %s3141_s23 }
 0x17d   : > { %v1202_v33 = vpop.permute.xlu0 %1201  ;;  %v1209_v47 = vmul.f32 %v1206_v29, %v1204_v20  ;;  %v1217_v27 = vmul.f32 %v1214_v6, %v1204_v20  ;;  %v1232_v56 = vadd.f32 %v3267_v1, %v1210_v41  ;;  %v1240_v62 = vadd.f32 %v3268_v19, %v1218_v53 }
 0x17e   : > { %v1208_v8 = vmul.f32 %v1206_v29, %v1202_v33  ;;  %v1216_v10 = vmul.f32 %v1214_v6, %v1202_v33  ;;  %v3270_v6 = vld [vmem:[#allocation27_spill] sm:$0xff] }
 0x17f   : > { %v1212_v45 = vadd.f32 %v1209_v47, %v1190_v60  ;;  %v1220_v18 = vadd.f32 %v1217_v27, %v1198_v40 }
 0x180   : > { %v1246_v12 = vpop.permute.xlu1 %1245  ;;  %v1211_v25 = vadd.f32 %v1208_v8, %v1189_v50  ;;  %v1219_v11 = vadd.f32 %v1216_v10, %v1197_v59  ;;  %v3271_v10 = vld [vmem:[#allocation13_spill] sm:$0xff] }
 0x181   : > { %v1244_v0 = vpop.permute.xlu0 %1243  ;;  %v1252_v23 = vmul.f32 %v1250_v48, %v1246_v12  ;;  %v1260_v26 = vmul.f32 %v1258_v3, %v1246_v12  ;;  %v1234_v61 = vadd.f32 %v2843_v7, %v1212_v45  ;;  %v1242_v44 = vadd.f32 %v2846_v13, %v1220_v18 }
 0x182   : > { %v1251_v38 = vmul.f32 %v1250_v48, %v1244_v0  ;;  %v1259_v30 = vmul.f32 %v1258_v3, %v1244_v0  ;;  %v1233_v29 = vadd.f32 %v3269_v31, %v1211_v25  ;;  %v1241_v20 = vadd.f32 %v3270_v6, %v1219_v11 }
 0x183   : > { %v1297_v12 = vmul.f32 %v2908_v24, %v3271_v10  ;;  %v1346_v0 = vstv %s3143_s8 }
 0x184   : > { %v1266_v49 = vpop.permute.xlu1 %1265  ;;  %v1254_v36 = vadd.f32 %v1251_v38, %v1232_v56  ;;  %v1262_v33 = vadd.f32 %v1259_v30, %v1240_v62  ;;  %v1263_v5 = vadd.f32 %v1260_v26, %v1241_v20 }
 0x185   : > { %v1248_v4 = vpop.permute.xlu0 %1247  ;;  %v1273_v35 = vmul.f32 %v1272_v34, %v1266_v49  ;;  %v1281_v51 = vmul.f32 %v1280_v57, %v1266_v49 }
 0x186   : > { %v1253_v16 = vmul.f32 %v1250_v48, %v1248_v4  ;;  %v1261_v42 = vmul.f32 %v1258_v3, %v1248_v4  ;;  %v1305_v48 = vmul.f32 %v2911_v28, %v3271_v10  ;;  %v1255_v3 = vadd.f32 %v1252_v23, %v1233_v29 }
 0x187   : > { %v1276_v58 = vadd.f32 %v1273_v35, %v1254_v36  ;;  %v1284_v32 = vadd.f32 %v1281_v51, %v1262_v33 }
 0x188   : > { %v1270_v54 = vpop.permute.xlu1 %1269  ;;  %v1256_v17 = vadd.f32 %v1253_v16, %v1234_v61  ;;  %v1264_v39 = vadd.f32 %v1261_v42, %v1242_v44 }
 0x189   : > { %v1268_v37 = vpop.permute.xlu0 %1267  ;;  %v1275_v46 = vmul.f32 %v1272_v34, %v1270_v54  ;;  %v1283_v8 = vmul.f32 %v1280_v57, %v1270_v54  ;;  %v1306_v24 = vadd.f32 %v1303_v9, %v1284_v32 }
 0x18a   : > { %v1274_v43 = vmul.f32 %v1272_v34, %v1268_v37  ;;  %v1282_v14 = vmul.f32 %v1280_v57, %v1268_v37  ;;  %v1298_v34 = vadd.f32 %v1295_v21, %v1276_v58 }
 0x18b   : > { %v1278_v41 = vadd.f32 %v1275_v46, %v1256_v17  ;;  %v1286_v53 = vadd.f32 %v1283_v8, %v1264_v39 }
 0x18c   : > { %v1312_v7 = vpop.permute.xlu1 %1311  ;;  %v1277_v50 = vadd.f32 %v1274_v43, %v1255_v3  ;;  %v1285_v59 = vadd.f32 %v1282_v14, %v1263_v5 }
 0x18d   : > { %v1310_v13 = vpop.permute.xlu0 %1309  ;;  %v1318_v57 = vmul.f32 %v1316_v52, %v1312_v7  ;;  %v1326_v28 = vmul.f32 %v1324_v15, %v1312_v7  ;;  %v1300_v56 = vadd.f32 %v1297_v12, %v1278_v41  ;;  %v1308_v21 = vadd.f32 %v1305_v48, %v1286_v53 }
 0x18e   : > { %v1317_v47 = vmul.f32 %v1316_v52, %v1310_v13  ;;  %v1325_v27 = vmul.f32 %v1324_v15, %v1310_v13  ;;  %v1299_v38 = vadd.f32 %v2947_v2, %v1277_v50  ;;  %v1307_v30 = vadd.f32 %v2951_v63, %v1285_v59 }
 0x190   : > { %v1332_v60 = vpop.permute.xlu1 %1331  ;;  %v1320_v40 = vadd.f32 %v1317_v47, %v1298_v34  ;;  %v1328_v25 = vadd.f32 %v1325_v27, %v1306_v24  ;;  %v1321_v31 = vadd.f32 %v1318_v57, %v1299_v38  ;;  %v1329_v63 = vadd.f32 %v1326_v28, %v1307_v30 }
 0x191   : > { %v1339_v11 = vmul.f32 %v1338_v22, %v1332_v60  ;;  %v1347_v49 = vmul.f32 %v1346_v0, %v1332_v60  ;;  %v1314_v55 = vpop.permute.xlu0 %1313 }
 0x192   : > { %v1319_v4 = vmul.f32 %v1316_v52, %v1314_v55  ;;  %v1327_v45 = vmul.f32 %v1324_v15, %v1314_v55 }
 0x193   : > { %v1342_v18 = vadd.f32 %v1339_v11, %v1320_v40  ;;  %v1350_v1 = vadd.f32 %v1347_v49, %v1328_v25 }
 0x194   : > { %v1336_v9 = vpop.permute.xlu1 %1335  ;;  %v1322_v19 = vadd.f32 %v1319_v4, %v1300_v56  ;;  %v1330_v62 = vadd.f32 %v1327_v45, %v1308_v21 }
 0x195   : > { %1353 = vst [vmem:[%s173_s16] sm:$0xff] %v1342_v18  ;;  %1588 = vst [vmem:[%s173_s16 + $0x18] sm:$0xff] %v1350_v1  ;;  %v1341_v35 = vmul.f32 %v1338_v22, %v1336_v9  ;;  %v1349_v51 = vmul.f32 %v1346_v0, %v1336_v9  ;;  %v1334_v2 = vpop.permute.xlu0 %1333 }
 0x196   : > { %v1340_v52 = vmul.f32 %v1338_v22, %v1334_v2  ;;  %v1348_v15 = vmul.f32 %v1346_v0, %v1334_v2 }
 0x197   : > { %v1344_v29 = vadd.f32 %v1341_v35, %v1322_v19  ;;  %v1352_v6 = vadd.f32 %v1349_v51, %v1330_v62 }
 0x198   : > { %v1343_v20 = vadd.f32 %v1340_v52, %v1321_v31  ;;  %v1351_v23 = vadd.f32 %v1348_v15, %v1329_v63 }
 0x199   : > { %1355 = vst [vmem:[%s173_s16 + $0x10] sm:$0xff] %v1344_v29  ;;  %1590 = vst [vmem:[%s173_s16 + $0x28] sm:$0xff] %v1352_v6 }
 0x19a   : > { %1354 = vst [vmem:[%s173_s16 + $0x8] sm:$0xff] %v1343_v20  ;;  %1589 = vst [vmem:[%s173_s16 + $0x20] sm:$0xff] %v1351_v23 }
 0x19b   : > { %1727 = shalt.err (!%p1724_p6)
}
 0x19c   : > { %s1728_s6 = scalar_lea.hbm %s3166_s25, 768  ;;  %s1732_s4 = scalar_lea.hbm %s3213_s2, 6144 }
 0x19d   : > { %p1729_p7 = scmp.ne.s32.totalorder %s3166_s25, %s1728_s6  ;;  %p1733_p4 = scmp.lt.u32.totalorder %s3166_s25, %s3213_s2 }
 0x19e   : > { %p1734_p2 = scmp.lt.u32.totalorder %s1732_s4, %s1728_s6  ;;  %p1736_p12 = scmp.lt.u32.totalorder %s1728_s6, %s3166_s25 }
 0x19f   : > { %p1730_p8 = pnand %p1729_p7, %p3272_p13 }
 0x1a0   : > { %p1735_p11 = por %p1734_p2, %p1733_p4 }
 0x1a1   : > { %p1731_p9 = pneg %p1730_p8 }
 0x1a2   : > { %p1737_p0 = por %p1736_p12, %p1735_p11 }
 0x1a4   : > { %p1738_p3 = pnand %p1737_p0, %p1731_p9 }
 0x1a6   : > { %1741 = shalt.err (!%p1738_p3)
}
 0x1a7   : > { %s1793_s8 = smov 128   ;;  %s1794_s20 = smov 8  }
 0x1a8   : > { %1605 = dma.vmem_to_hbm [thread:$0]  (%p3272_p13), %s3168_s17, 768, %s3166_s25, %s1361_s26, %s1793_s8, %s1793_s8, %s1794_s20  }
 0x1a9 PF: > { %p1622_p10 = scmp.ge.s32.totalorder %s1784_s12, 2  ;;  %s1389_s14 = sand.u32 1, %s1772_s9  }
 0x1aa   : > { %p3273_p5 = scmp.ne.s32.totalorder %s3226_s22, 0  ;;  %s1390_s16 = scalar_lea.sflag [#allocation4], %s1389_s14 }
 0x1ac   : > { %p1616_p1 = pnand %p1622_p10, %p3273_p5 }
 0x1ae   : > { %1767 = dma.done.wait (!%p1616_p1), %s1390_s16, 768  }
 0x1af   : > { %1769 = vsyncadd (!%p1616_p1), %s1390_s16, 4294966528  ;;  %p16_p6 = scmp.ge.s32.totalorder %s1835_s15, 10   ;;  %s3274_s9 = smov %s1776_s10 }
 0x1b0   : > { %s3275_s10 = smov %s1780_s11  ;;  %s3276_s11 = smov %s1847_s18 }
 0x1b1   : > { %s3277_s12 = smov %s1835_s15  ;;  %18 = sbr.rel (!%p16_p6) target bundleno = 6 (0x6), region = 84 }
 0x1b8   :  { %1395 = vsyncpa [#allocation3], 1 }
 0x1b9   :  { %1397 = vsyncpa [#allocation3 + $0x1], 1 }
 0x1ba   :  { %1398 = vsyncpa [#allocation4], 1 }
 0x1bb   :  { %1400 = vsyncpa [#allocation4 + $0x1], 1 }
 0x1bc   :  { %1401 = vsyncpa [#allocation5], 1 }
 0x1bd   :  { %1403 = vsyncpa [#allocation5 + $0x1], 1 }

</bundles_post_ra>
